<compile_context>
chip_gen: v6e
topology: v6e:2x2x1
jax: 0.10.0
libtpu: 0.0.40
codegen_flags: <defaults>
</compile_context>

<pallas_src>
import jax
import jax.numpy as jnp
import numpy as np
from jax.experimental import pallas as pl
from jax.experimental.pallas import tpu as pltpu

N_NODES  = 8     # nodes per graph
N_GRAPHS = 3     # anchor / positive / negative
F_IN     = 16    # input feature dim
HIDDEN   = 32    # hidden dim of GCN layer 1
EMB      = 32    # embedding dim (GCN layer 2 output)
LANE_PAD = 128   # lane-dense output width (EMB padded to a full 128-lane vreg row)
W_ROWS   = F_IN + 1 + HIDDEN + 1   # packed weight slab rows: [W1; b1; W2; b2]
TB       = 8     # triplets per grid step  (TB*3 graphs = TB*3*8 node rows per step)

assert HIDDEN == EMB, "packed weight slab assumes HIDDEN == EMB"
assert (TB * N_GRAPHS) % 8 == 0, "per-step output rows must be sublane-aligned"


def gnn_kernel(a_ref, x_ref, w_ref, out_ref):
    """One grid step processes TB triplets (= TB*3 graphs) of the batch.

    a_ref  : (G, N, N)        bf16  per-graph symmetric-normalized adjacency
    x_ref  : (G, N, F)        bf16  node features
    w_ref  : (W_ROWS, HIDDEN) f32   packed [W1; b1; W2; b2], constant across steps
    out_ref: (G, 128)         f32   graph embeddings; lanes [0:EMB) valid, rest zero
    """
    g = a_ref.shape[0]
    a = a_ref[...]                                            # (G, N, N) bf16
    x = x_ref[...]                                            # (G, N, F) bf16

    w1 = w_ref[0:F_IN, :].astype(jnp.bfloat16)                # (F, H)
    b1 = w_ref[F_IN:F_IN + 1, :]                              # (1, H) f32
    w2 = w_ref[F_IN + 1:F_IN + 1 + HIDDEN, :].astype(jnp.bfloat16)   # (H, E)
    b2 = w_ref[F_IN + 1 + HIDDEN:W_ROWS, :]                   # (1, E) f32

    # Layer 1 (reassociated): H1 = ReLU((A @ X) @ W1 + b1)
    ax = jnp.einsum('gij,gjf->gif', a, x,
                    preferred_element_type=jnp.float32)       # (G, N, F) f32
    h = jnp.dot(ax.reshape(g * N_NODES, F_IN).astype(jnp.bfloat16), w1,
                preferred_element_type=jnp.float32) + b1      # (G*N, H) f32
    h = jnp.maximum(h, 0.0)
    hb = h.reshape(g, N_NODES, HIDDEN).astype(jnp.bfloat16)   # N == 8 -> layout-preserving

    # Layer 2 fused with the global mean pool (pool is linear, commutes with W2+b2):
    #   emb_g = mean_i (A_g @ H1_g)[i, :] @ W2 + b2
    ah = jnp.einsum('gij,gjh->gih', a, hb,
                    preferred_element_type=jnp.float32)       # (G, N, H) f32
    z = jnp.mean(ah, axis=1)                                  # (G, H) f32
    emb = jnp.dot(z.astype(jnp.bfloat16), w2,
                  preferred_element_type=jnp.float32) + b2    # (G, E) f32

    # Lane-dense writeback: pad EMB -> 128 lanes so the store is a full, unmasked vst.
    out_ref[...] = jnp.concatenate(
        [emb, jnp.zeros((g, LANE_PAD - EMB), jnp.float32)], axis=1)


def siamese_gnn_batched(a, x, params, *, tb=TB):
    """a: (B, 3, N, N) f32, x: (B, 3, N, F) f32 -> embeddings (B, 3, EMB) f32."""
    w1, b1, w2, b2 = params
    batch = a.shape[0]
    b_pad = ((batch + tb - 1) // tb) * tb
    if b_pad != batch:                        # pad the batch up to a multiple of TB triplets
        a = jnp.concatenate(
            [a, jnp.zeros((b_pad - batch,) + a.shape[1:], a.dtype)], axis=0)
        x = jnp.concatenate(
            [x, jnp.zeros((b_pad - batch,) + x.shape[1:], x.dtype)], axis=0)

    g_total = b_pad * N_GRAPHS
    g_blk = tb * N_GRAPHS
    a_all = a.reshape(g_total, N_NODES, N_NODES).astype(jnp.bfloat16)   # halve DMA bytes
    x_all = x.reshape(g_total, N_NODES, F_IN).astype(jnp.bfloat16)
    w_slab = jnp.concatenate([w1, b1, w2, b2], axis=0)                  # (W_ROWS, 32) f32

    out = pl.pallas_call(
        gnn_kernel,
        out_shape=jax.ShapeDtypeStruct((g_total, LANE_PAD), jnp.float32),
        grid=(b_pad // tb,),
        in_specs=[
            pl.BlockSpec((g_blk, N_NODES, N_NODES), lambda i: (i, 0, 0)),
            pl.BlockSpec((g_blk, N_NODES, F_IN),    lambda i: (i, 0, 0)),
            pl.BlockSpec((W_ROWS, HIDDEN),          lambda i: (0, 0)),   # resident weights
        ],
        out_specs=pl.BlockSpec((g_blk, LANE_PAD), lambda i: (i, 0)),
        compiler_params=pltpu.CompilerParams(dimension_semantics=("parallel",)),
    )(a_all, x_all, w_slab)

    return out[:batch * N_GRAPHS, :EMB].reshape(batch, N_GRAPHS, EMB)


def siamese_gnn_forward(a_triplet, x_triplet, params):
    """Original SiameseGNN semantics: one (data1, data2, data3) triplet -> (emb1, emb2, emb3)."""
    emb = siamese_gnn_batched(a_triplet[None], x_triplet[None], params)[0]
    return emb[0], emb[1], emb[2]


def init_params(key):
    k1, k2, k3, k4 = jax.random.split(key, 4)
    w1 = jax.random.normal(k1, (F_IN, HIDDEN), jnp.float32) * (1.0 / jnp.sqrt(F_IN))
    b1 = jax.random.normal(k2, (1, HIDDEN), jnp.float32) * 0.01
    w2 = jax.random.normal(k3, (HIDDEN, EMB), jnp.float32) * (1.0 / jnp.sqrt(HIDDEN))
    b2 = jax.random.normal(k4, (1, EMB), jnp.float32) * 0.01
    return w1, b1, w2, b2


def _reference_forward(a, x, params):
    """Pure-JAX f32 reference: per-graph 2-layer GCN + global mean pool."""
    w1, b1, w2, b2 = params
    ax = jnp.einsum('bgij,bgjf->bgif', a, x)
    h = jnp.maximum(jnp.einsum('bgif,fh->bgih', ax, w1) + b1, 0.0)
    ah = jnp.einsum('bgij,bgjh->bgih', a, h)
    out = jnp.einsum('bgih,he->bgie', ah, w2) + b2
    return out.mean(axis=2)                                   # (B, 3, EMB)


if __name__ == "__main__":
    key = jax.random.PRNGKey(0)
    kx, kp = jax.random.split(key)

    B = 16  # triplets per call (batched per the performance feedback)

    # TODO(synk): the original module receives PyG Data objects (sparse edge_index); here the
    # adjacency is densified + symmetric-normalized on the host before entering the kernel.
    def normalized_adjacency(edges, n):
        adj = np.zeros((n, n), np.float32)
        for s, d in edges:
            adj[s, d] = 1.0
            adj[d, s] = 1.0                                   # undirected
        np.fill_diagonal(adj, 1.0)                            # self loops
        deg = adj.sum(axis=1)
        dinv = np.where(deg > 0, 1.0 / np.sqrt(deg), 0.0).astype(np.float32)
        return adj * dinv[:, None] * dinv[None, :]

    # Deterministic graph structures: ring + one chord that varies per graph.
    a_np = np.zeros((B, N_GRAPHS, N_NODES, N_NODES), np.float32)
    for b in range(B):
        for gr in range(N_GRAPHS):
            k = b * N_GRAPHS + gr
            edges = [(i, (i + 1) % N_NODES) for i in range(N_NODES)]
            edges.append((k % N_NODES, (k + 3) % N_NODES))
            a_np[b, gr] = normalized_adjacency(edges, N_NODES)
    a_batch = jnp.asarray(a_np)                                               # (B, 3, N, N)
    x_batch = jax.random.normal(kx, (B, N_GRAPHS, N_NODES, F_IN), jnp.float32)

    params = init_params(kp)

    fwd = jax.jit(siamese_gnn_batched)
    emb = fwd(a_batch, x_batch, params)                                       # (B, 3, EMB)
    jax.block_until_ready(emb)
    assert emb.shape == (B, N_GRAPHS, EMB)

    ref = _reference_forward(a_batch, x_batch, params)
    err = float(jnp.max(jnp.abs(emb - ref)))
    assert err < 5e-2, f"max abs error {err}"        # bf16 MXU inputs => looser tolerance

    # Original SiameseGNN API: single (data1, data2, data3) triplet -> tuple of embeddings.
    emb1, emb2, emb3 = siamese_gnn_forward(a_batch[0], x_batch[0], params)
    jax.block_until_ready((emb1, emb2, emb3))
    assert emb1.shape == (EMB,) and emb2.shape == (EMB,) and emb3.shape == (EMB,)
    assert float(jnp.max(jnp.abs(jnp.stack([emb1, emb2, emb3]) - ref[0]))) < 5e-2

    print("KERNEL_OK")
</pallas_src>

<mosaic_0001>
module attributes {stable_mosaic.version = 11 : i64} {
  func.func @gnn_kernel(%arg0: i32, %arg1: memref<24x8x8xbf16, #tpu.memory_space<vmem>>, %arg2: memref<24x8x16xbf16, #tpu.memory_space<vmem>>, %arg3: memref<50x32xf32, #tpu.memory_space<vmem>>, %arg4: memref<24x128xf32, #tpu.memory_space<vmem>>) attributes {dimension_semantics = [#tpu.dimension_semantics<parallel>], iteration_bounds = array<i64: 2>, scalar_prefetch = 0 : i64, scratch_operands = 0 : i64, tpu.core_type = #tpu.core_type<tc>, window_params = [{transform_indices = @transform_0, window_bounds = array<i64: 24, 8, 8>}, {transform_indices = @transform_1, window_bounds = array<i64: 24, 8, 16>}, {pipeline_mode = #tpu.pipeline_mode<synchronous>, transform_indices = @transform_2, window_bounds = array<i64: 50, 32>}, {transform_indices = @transform_3, window_bounds = array<i64: 24, 128>}]} {
    %c0 = arith.constant 0 : index
    %c0_0 = arith.constant 0 : index
    %c0_1 = arith.constant 0 : index
    %0 = vector.load %arg1[%c0, %c0_0, %c0_1] : memref<24x8x8xbf16, #tpu.memory_space<vmem>>, vector<24x8x8xbf16>
    %c0_2 = arith.constant 0 : index
    %c0_3 = arith.constant 0 : index
    %c0_4 = arith.constant 0 : index
    %1 = vector.load %arg2[%c0_2, %c0_3, %c0_4] : memref<24x8x16xbf16, #tpu.memory_space<vmem>>, vector<24x8x16xbf16>
    %c0_5 = arith.constant 0 : index
    %c0_6 = arith.constant 0 : index
    %2 = vector.load %arg3[%c0_5, %c0_6] : memref<50x32xf32, #tpu.memory_space<vmem>>, vector<16x32xf32>
    %3 = arith.truncf %2 : vector<16x32xf32> to vector<16x32xbf16>
    %c16 = arith.constant 16 : index
    %c0_7 = arith.constant 0 : index
    %4 = vector.load %arg3[%c16, %c0_7] : memref<50x32xf32, #tpu.memory_space<vmem>>, vector<1x32xf32>
    %c17 = arith.constant 17 : index
    %c0_8 = arith.constant 0 : index
    %5 = vector.load %arg3[%c17, %c0_8] : memref<50x32xf32, #tpu.memory_space<vmem>>, vector<32x32xf32>
    %6 = arith.truncf %5 : vector<32x32xf32> to vector<32x32xbf16>
    %c49 = arith.constant 49 : index
    %c0_9 = arith.constant 0 : index
    %7 = vector.load %arg3[%c49, %c0_9] : memref<50x32xf32, #tpu.memory_space<vmem>>, vector<1x32xf32>
    "tpu.trace_start"() <{level = 10 : i32, message = "gij,gjf->gif"}> : () -> ()
    %cst = arith.constant dense<0.000000e+00> : vector<24x8x16xf32>
    %8 = tpu.matmul %0, %1, %cst {dimension_numbers = #tpu.dot_dimension_numbers<[2], [1], [1], [2], [0, 0, 0, 1, 1, 2], [0], [0]>} : vector<24x8x8xbf16>, vector<24x8x16xbf16>, vector<24x8x16xf32> -> vector<24x8x16xf32>
    "tpu.trace_stop"() : () -> ()
    %9 = vector.shape_cast %8 : vector<24x8x16xf32> to vector<192x16xf32>
    %10 = arith.truncf %9 : vector<192x16xf32> to vector<192x16xbf16>
    %cst_10 = arith.constant dense<0.000000e+00> : vector<192x32xf32>
    %11 = tpu.matmul %10, %3, %cst_10 {dimension_numbers = #tpu.dot_dimension_numbers<[1], [0], [0], [1], [0, 0, 1, 1], [], []>} : vector<192x16xbf16>, vector<16x32xbf16>, vector<192x32xf32> -> vector<192x32xf32>
    %12 = vector.broadcast %4 : vector<1x32xf32> to vector<192x32xf32>
    %13 = arith.addf %11, %12 : vector<192x32xf32>
    %cst_11 = arith.constant 0.000000e+00 : f32
    %14 = vector.broadcast %cst_11 : f32 to vector<192x32xf32>
    %15 = arith.maximumf %13, %14 : vector<192x32xf32>
    %16 = vector.shape_cast %15 : vector<192x32xf32> to vector<24x8x32xf32>
    %17 = arith.truncf %16 : vector<24x8x32xf32> to vector<24x8x32xbf16>
    "tpu.trace_start"() <{level = 10 : i32, message = "gij,gjh->gih"}> : () -> ()
    %cst_12 = arith.constant dense<0.000000e+00> : vector<24x8x32xf32>
    %18 = tpu.matmul %0, %17, %cst_12 {dimension_numbers = #tpu.dot_dimension_numbers<[2], [1], [1], [2], [0, 0, 0, 1, 1, 2], [0], [0]>} : vector<24x8x8xbf16>, vector<24x8x32xbf16>, vector<24x8x32xf32> -> vector<24x8x32xf32>
    "tpu.trace_stop"() : () -> ()
    %cst_13 = arith.constant dense<0.000000e+00> : vector<24x32xf32>
    %19 = vector.multi_reduction <add>, %18, %cst_13 [1] : vector<24x8x32xf32> to vector<24x32xf32>
    %cst_14 = arith.constant 8.000000e+00 : f32
    %20 = vector.broadcast %cst_14 : f32 to vector<24x32xf32>
    %21 = arith.divf %19, %20 : vector<24x32xf32>
    %22 = arith.truncf %21 : vector<24x32xf32> to vector<24x32xbf16>
    %cst_15 = arith.constant dense<0.000000e+00> : vector<24x32xf32>
    %23 = tpu.matmul %22, %6, %cst_15 {dimension_numbers = #tpu.dot_dimension_numbers<[1], [0], [0], [1], [0, 0, 1, 1], [], []>} : vector<24x32xbf16>, vector<32x32xbf16>, vector<24x32xf32> -> vector<24x32xf32>
    %24 = vector.broadcast %7 : vector<1x32xf32> to vector<24x32xf32>
    %25 = arith.addf %23, %24 : vector<24x32xf32>
    %cst_16 = arith.constant 0.000000e+00 : f32
    %26 = vector.broadcast %cst_16 : f32 to vector<24x96xf32>
    %27 = tpu.concatenate %25, %26 in 1 : vector<24x32xf32>, vector<24x96xf32> -> vector<24x128xf32>
    %c0_17 = arith.constant 0 : index
    %c0_18 = arith.constant 0 : index
    %28 = vector.load %arg4[%c0_17, %c0_18] : memref<24x128xf32, #tpu.memory_space<vmem>>, vector<24x128xf32>
    tpu.vector_store %arg4[%c0_17, %c0_18], %27 {strides = array<i32>} : memref<24x128xf32, #tpu.memory_space<vmem>>, vector<24x128xf32>,
    return
  }
  func.func @transform_0(%arg0: i32) -> (i32, i32, i32) {
    %c0_i32 = arith.constant 0 : i32
    %c0_i32_0 = arith.constant 0 : i32
    %c0_i32_1 = arith.constant 0 : i32
    return %arg0, %c0_i32, %c0_i32_0 : i32, i32, i32
  }
  func.func @transform_1(%arg0: i32) -> (i32, i32, i32) {
    %c0_i32 = arith.constant 0 : i32
    %c0_i32_0 = arith.constant 0 : i32
    %c0_i32_1 = arith.constant 0 : i32
    return %arg0, %c0_i32, %c0_i32_0 : i32, i32, i32
  }
  func.func @transform_2(%arg0: i32) -> (i32, i32) {
    %c0_i32 = arith.constant 0 : i32
    %c0_i32_0 = arith.constant 0 : i32
    %c0_i32_1 = arith.constant 0 : i32
    return %c0_i32, %c0_i32_0 : i32, i32
  }
  func.func @transform_3(%arg0: i32) -> (i32, i32) {
    %c0_i32 = arith.constant 0 : i32
    %c0_i32_0 = arith.constant 0 : i32
    return %arg0, %c0_i32 : i32, i32
  }
}

</mosaic_0001>

<bundles_post_ra>
// kernel: siamese_gnn_batched.1
= control target key start
LH: loop header
LB: loop body
LE: loop exit
PB: predicated region body
PF: predicated region fallthrough
CT: control target
= control target key end

     0   :  { %s3601_s12 = smov 0   ;;  %s4131_s0 = inlined_call_operand.vmem [shape: bf16[48,8,8], index: 0, kind: input, shape index: {}]   ;;  %s4132_s1 = inlined_call_operand.vmem [shape: bf16[48,8,16], index: 1, kind: input, shape index: {}]   ;;  %s4133_s2 = inlined_call_operand.vmem [shape: f32[50,32], index: 2, kind: input, shape index: {}]   ;;  %s4134_s3 = inlined_call_operand.vmem [shape: f32[48,128], index: 3, kind: output, shape index: {}]  }
   0x1 LB: > { %s3052_s13 = sadd.s32 4294967295, %s3577_s12   ;;  %p3056_p0 = scmp.ge.s32.totalorder %s3577_s12, 1  ;;  %s3577_s12 = sphi %s3601_s12, %s13_s12  }
   0x2   : > { %p149_p1 = scmp.lt.s32.totalorder %s3577_s12, 3 }
   0x4   : > { %p150_p2 = pnand %p3056_p0, %p149_p1 }
   0x5   : > { %s178_s14 = smul.u32 (!%p150_p2), 24, %s3052_s13 }
   0x6   : > { %153 = sbr.rel (%p150_p2) target bundleno = 957 (0x3bd), region = 32 }
   0x7   : > { %p179_p3 = scmp.lt.s32.totalorder (!%p150_p2), %s178_s14, 47  ;;  %s190_s9 = smul.u32 (!%p150_p2), 3, %s3052_s13 }
   0x9   : > { %p191_p4 = scmp.lt.s32.totalorder (!%p150_p2), %s190_s9, 5 }
   0xb   : > { %v3579_v0 = vmov 0.0   ;;  %vm3580_vm0 = vmmov 0   ;;  %s4136_s14 = smov (!%p179_p3, %s178_s14), 47  ;;  %vm260_vm1 = vcmask 1043456   ;;  %vm256_vm2 = vcmask 64512   ;;  %s4138_s9 = smov (!%p191_p4, %s190_s9), 5 }
   0xc   : > { %3239 = vmatprep.subr.bf16.mxu0 %v3579_v0  ;;  %3245 = vmatprep.subr.bf16.mxu1 %v3579_v0  ;;  %s3057_s15 = sshll.u32 %s4136_s14, 2  ;;  %vm1378_vm3 = vcmask 130048   ;;  %vm2624_vm4 = vcmask 261120   ;;  %vm2894_vm5 = vcmask 1041409   ;;  %vm2896_vm6 = vcmask 1042434   ;;  %s3059_s10 = sshll.u32 %s4138_s9, 3 }
   0xd   : > { %3241 = vmatprep.mubr.msk.bf16.mxu0 %vm3580_vm0, %v3579_v0  ;;  %3247 = vmatprep.mubr.msk.bf16.mxu1 %vm3580_vm0, %v3579_v0  ;;  %s3620_s18 = scalar_lea.vmem %s4132_s1, %s3057_s15  ;;  %s3625_s21 = scalar_lea.vmem %s4131_s0, %s3057_s15  ;;  %vm2898_vm7 = vcmask 1043459   ;;  %vm2900_vm8 = vcmask 1044484   ;;  %vm2902_vm9 = vcmask 1045509   ;;  %vm2904_vm10 = vcmask 1046534  }
   0xe   : > { %v221_v1 = vld [vmem:[%s3620_s18] sm:$0xf]  ;;  %v222_v2 = vld [vmem:[%s3620_s18 + $0x4] sm:$0xf]  ;;  %v223_v5 = vld [vmem:[%s3620_s18 + $0x8] sm:$0xf]  ;;  %s194_s17 = scalar_lea.vmem %s4134_s3, %s3059_s10 }
   0xf   : > { %v262_v3 = vsel %vm260_vm1, %v221_v1, 0  ;;  %v308_v4 = vsel %vm260_vm1, %v222_v2, 0  ;;  %v3633_v6 = vld [vmem:[%s3625_s21] sm:$0xf]  ;;  %v3636_v7 = vld [vmem:[%s3625_s21 + $0x4] sm:$0xf] }
  0x10   : > { %3240 = vmatpush3.bf16.msra.mxu0 %v262_v3  ;;  %3246 = vmatpush3.bf16.msra.mxu1 %v308_v4  ;;  %v224_v8 = vld [vmem:[%s3620_s18 + $0xc] sm:$0xf]  ;;  %v354_v9 = vsel %vm260_vm1, %v223_v5, 0  ;;  %v225_v11 = vld [vmem:[%s3620_s18 + $0x10] sm:$0xf]  ;;  %v245_v4 = vld [vmem:[%s4133_s2] sm:$0xff] }
  0x11   : > { %3251 = vmatprep.subr.bf16.mxu0 %v3579_v0  ;;  %3257 = vmatprep.subr.bf16.mxu1 %v3579_v0  ;;  %v400_v10 = vsel %vm260_vm1, %v224_v8, 0  ;;  %v226_v12 = vld [vmem:[%s3620_s18 + $0x14] sm:$0xf]  ;;  %v3656_v13 = vld [vmem:[%s3625_s21 + $0x8] sm:$0xf]  ;;  %v446_v15 = vsel %vm260_vm1, %v225_v11, 0 }
  0x12   : > { %v3659_v14 = vld [vmem:[%s3625_s21 + $0xc] sm:$0xf]  ;;  %v492_v16 = vsel %vm260_vm1, %v226_v12, 0  ;;  %v227_v17 = vld [vmem:[%s3620_s18 + $0x18] sm:$0xf]  ;;  %vm2906_vm11 = vcmask 1047559  }
  0x13   : > { %3242 = vmatmul.mubr.msk.bf16.vlgmr.msra.gmra.mxu0 %vm256_vm2, %v3633_v6  ;;  %3248 = vmatmul.mubr.msk.bf16.vlgmr.msra.gmra.mxu1 %vm256_vm2, %v3636_v7  ;;  %v228_v18 = vld [vmem:[%s3620_s18 + $0x1c] sm:$0xf]  ;;  %v3676_v19 = vld [vmem:[%s3625_s21 + $0x10] sm:$0xf]  ;;  %v3679_v20 = vld [vmem:[%s3625_s21 + $0x14] sm:$0xf] }
  0x14   : > { %3252 = vmatpush3.bf16.msra.mxu0 %v354_v9  ;;  %3258 = vmatpush3.bf16.msra.mxu1 %v400_v10  ;;  %v538_v21 = vsel %vm260_vm1, %v227_v17, 0  ;;  %v584_v22 = vsel %vm260_vm1, %v228_v18, 0  ;;  %v229_v23 = vld [vmem:[%s3620_s18 + $0x20] sm:$0xf]  ;;  %v230_v24 = vld [vmem:[%s3620_s18 + $0x24] sm:$0xf] }
  0x15   : > { %3253 = vmatprep.mubr.msk.bf16.mxu0 %vm3580_vm0, %v3579_v0  ;;  %3259 = vmatprep.mubr.msk.bf16.mxu1 %vm3580_vm0, %v3579_v0  ;;  %v3696_v25 = vld [vmem:[%s3625_s21 + $0x18] sm:$0xf]  ;;  %v3699_v26 = vld [vmem:[%s3625_s21 + $0x1c] sm:$0xf]  ;;  %v630_v27 = vsel %vm260_vm1, %v229_v23, 0  ;;  %v676_v28 = vsel %vm260_vm1, %v230_v24, 0 }
  0x16   : > { %3263 = vmatprep.subr.bf16.mxu0 %v3579_v0  ;;  %3269 = vmatprep.subr.bf16.mxu1 %v3579_v0  ;;  %v231_v29 = vld [vmem:[%s3620_s18 + $0x28] sm:$0xf]  ;;  %v232_v30 = vld [vmem:[%s3620_s18 + $0x2c] sm:$0xf]  ;;  %v3716_v31 = vld [vmem:[%s3625_s21 + $0x20] sm:$0xf] }
  0x17   : > { %v3719_v32 = vld [vmem:[%s3625_s21 + $0x24] sm:$0xf]  ;;  %v722_v33 = vsel %vm260_vm1, %v231_v29, 0  ;;  %v768_v34 = vsel %vm260_vm1, %v232_v30, 0  ;;  %v233_v35 = vld [vmem:[%s3620_s18 + $0x30] sm:$0xf] }
  0x18   : > { %v234_v36 = vld [vmem:[%s3620_s18 + $0x34] sm:$0xf]  ;;  %v3736_v37 = vld [vmem:[%s3625_s21 + $0x28] sm:$0xf]  ;;  %v3739_v38 = vld [vmem:[%s3625_s21 + $0x2c] sm:$0xf] }
  0x19   : > { %v814_v39 = vsel %vm260_vm1, %v233_v35, 0  ;;  %v860_v40 = vsel %vm260_vm1, %v234_v36, 0  ;;  %v235_v41 = vld [vmem:[%s3620_s18 + $0x38] sm:$0xf]  ;;  %v236_v42 = vld [vmem:[%s3620_s18 + $0x3c] sm:$0xf] }
  0x1a   : > { %v3756_v43 = vld [vmem:[%s3625_s21 + $0x30] sm:$0xf]  ;;  %v3759_v44 = vld [vmem:[%s3625_s21 + $0x34] sm:$0xf]  ;;  %v906_v45 = vsel %vm260_vm1, %v235_v41, 0  ;;  %v952_v46 = vsel %vm260_vm1, %v236_v42, 0 }
  0x1b   : > { %3254 = vmatmul.mubr.msk.bf16.vlgmr.msra.gmra.mxu0 %vm256_vm2, %v3656_v13  ;;  %3260 = vmatmul.mubr.msk.bf16.vlgmr.msra.gmra.mxu1 %vm256_vm2, %v3659_v14  ;;  %v237_v47 = vld [vmem:[%s3620_s18 + $0x40] sm:$0xf]  ;;  %v238_v48 = vld [vmem:[%s3620_s18 + $0x44] sm:$0xf]  ;;  %v3776_v49 = vld [vmem:[%s3625_s21 + $0x38] sm:$0xf] }
  0x1c   : > { %3264 = vmatpush3.bf16.msra.mxu0 %v446_v15  ;;  %3270 = vmatpush3.bf16.msra.mxu1 %v492_v16  ;;  %v3779_v50 = vld [vmem:[%s3625_s21 + $0x3c] sm:$0xf]  ;;  %v998_v51 = vsel %vm260_vm1, %v237_v47, 0  ;;  %v1044_v52 = vsel %vm260_vm1, %v238_v48, 0  ;;  %v239_v53 = vld [vmem:[%s3620_s18 + $0x48] sm:$0xf] }
  0x1d   : > { %3265 = vmatprep.mubr.msk.bf16.mxu0 %vm3580_vm0, %v3579_v0  ;;  %3271 = vmatprep.mubr.msk.bf16.mxu1 %vm3580_vm0, %v3579_v0  ;;  %v240_v54 = vld [vmem:[%s3620_s18 + $0x4c] sm:$0xf]  ;;  %v3796_v55 = vld [vmem:[%s3625_s21 + $0x40] sm:$0xf]  ;;  %v3799_v56 = vld [vmem:[%s3625_s21 + $0x44] sm:$0xf] }
  0x1e   : > { %3275 = vmatprep.subr.bf16.mxu0 %v3579_v0  ;;  %3281 = vmatprep.subr.bf16.mxu1 %v3579_v0  ;;  %v1090_v57 = vsel %vm260_vm1, %v239_v53, 0  ;;  %v1136_v58 = vsel %vm260_vm1, %v240_v54, 0  ;;  %v241_v59 = vld [vmem:[%s3620_s18 + $0x50] sm:$0xf]  ;;  %v242_v60 = vld [vmem:[%s3620_s18 + $0x54] sm:$0xf] }
  0x1f   : > { %v3816_v61 = vld [vmem:[%s3625_s21 + $0x48] sm:$0xf]  ;;  %v3819_v62 = vld [vmem:[%s3625_s21 + $0x4c] sm:$0xf]  ;;  %v1182_v63 = vsel %vm260_vm1, %v241_v59, 0  ;;  %v1228_v1 = vsel %vm260_vm1, %v242_v60, 0 }
  0x20   : > { %v243_v2 = vld [vmem:[%s3620_s18 + $0x58] sm:$0xf]  ;;  %v244_v3 = vld [vmem:[%s3620_s18 + $0x5c] sm:$0xf]  ;;  %v246_v5 = vld [vmem:[%s4133_s2 + $0x8] sm:$0xff] }
  0x21   : > { %v3842_v8 = vld [vmem:[%s3625_s21 + $0x50] sm:$0xf]  ;;  %v3845_v9 = vld [vmem:[%s3625_s21 + $0x54] sm:$0xf]  ;;  %v1274_v10 = vsel %vm260_vm1, %v243_v2, 0  ;;  %v1320_v11 = vsel %vm260_vm1, %v244_v3, 0  ;;  %v247_v12 = vpack.c.bf16 %v246_v5, %v245_v4 }
  0x22   : > { %v3859_v15 = vld [vmem:[%s3625_s21 + $0x58] sm:$0xf]  ;;  %v3862_v16 = vld [vmem:[%s3625_s21 + $0x5c] sm:$0xf] }
  0x23   : > { %3266 = vmatmul.mubr.msk.bf16.vlgmr.msra.gmra.mxu0 %vm256_vm2, %v3676_v19  ;;  %3272 = vmatmul.mubr.msk.bf16.vlgmr.msra.gmra.mxu1 %vm256_vm2, %v3679_v20 }
  0x24   : > { %3276 = vmatpush3.bf16.msra.mxu0 %v538_v21  ;;  %3282 = vmatpush3.bf16.msra.mxu1 %v584_v22 }
  0x25   : > { %3277 = vmatprep.mubr.msk.bf16.mxu0 %vm3580_vm0, %v3579_v0  ;;  %3283 = vmatprep.mubr.msk.bf16.mxu1 %vm3580_vm0, %v3579_v0 }
  0x26   : > { %3287 = vmatprep.subr.bf16.mxu0 %v3579_v0  ;;  %3293 = vmatprep.subr.bf16.mxu1 %v3579_v0 }
  0x2b   : > { %3278 = vmatmul.mubr.msk.bf16.vlgmr.msra.gmra.mxu0 %vm256_vm2, %v3696_v25  ;;  %3284 = vmatmul.mubr.msk.bf16.vlgmr.msra.gmra.mxu1 %vm256_vm2, %v3699_v26 }
  0x2c   : > { %3288 = vmatpush3.bf16.msra.mxu0 %v630_v27  ;;  %3294 = vmatpush3.bf16.msra.mxu1 %v676_v28 }
  0x2d   : > { %3289 = vmatprep.mubr.msk.bf16.mxu0 %vm3580_vm0, %v3579_v0  ;;  %3295 = vmatprep.mubr.msk.bf16.mxu1 %vm3580_vm0, %v3579_v0 }
  0x2e   : > { %3299 = vmatprep.subr.bf16.mxu0 %v3579_v0  ;;  %3305 = vmatprep.subr.bf16.mxu1 %v3579_v0 }
  0x33   : > { %3290 = vmatmul.mubr.msk.bf16.vlgmr.msra.gmra.mxu0 %vm256_vm2, %v3716_v31  ;;  %3296 = vmatmul.mubr.msk.bf16.vlgmr.msra.gmra.mxu1 %vm256_vm2, %v3719_v32 }
  0x34   : > { %3300 = vmatpush3.bf16.msra.mxu0 %v722_v33  ;;  %3306 = vmatpush3.bf16.msra.mxu1 %v768_v34 }
  0x35   : > { %3301 = vmatprep.mubr.msk.bf16.mxu0 %vm3580_vm0, %v3579_v0  ;;  %3307 = vmatprep.mubr.msk.bf16.mxu1 %vm3580_vm0, %v3579_v0 }
  0x36   : > { %3311 = vmatprep.subr.bf16.mxu0 %v3579_v0  ;;  %3317 = vmatprep.subr.bf16.mxu1 %v3579_v0 }
  0x3b   : > { %3302 = vmatmul.mubr.msk.bf16.vlgmr.msra.gmra.mxu0 %vm256_vm2, %v3736_v37  ;;  %3308 = vmatmul.mubr.msk.bf16.vlgmr.msra.gmra.mxu1 %vm256_vm2, %v3739_v38 }
  0x3c   : > { %3312 = vmatpush3.bf16.msra.mxu0 %v814_v39  ;;  %3318 = vmatpush3.bf16.msra.mxu1 %v860_v40 }
  0x3d   : > { %3313 = vmatprep.mubr.msk.bf16.mxu0 %vm3580_vm0, %v3579_v0  ;;  %3319 = vmatprep.mubr.msk.bf16.mxu1 %vm3580_vm0, %v3579_v0 }
  0x3e   : > { %3323 = vmatprep.subr.bf16.mxu0 %v3579_v0  ;;  %3329 = vmatprep.subr.bf16.mxu1 %v3579_v0 }
  0x43   : > { %3314 = vmatmul.mubr.msk.bf16.vlgmr.msra.gmra.mxu0 %vm256_vm2, %v3756_v43  ;;  %3320 = vmatmul.mubr.msk.bf16.vlgmr.msra.gmra.mxu1 %vm256_vm2, %v3759_v44 }
  0x44   : > { %3324 = vmatpush3.bf16.msra.mxu0 %v906_v45  ;;  %3330 = vmatpush3.bf16.msra.mxu1 %v952_v46 }
  0x45   : > { %3325 = vmatprep.mubr.msk.bf16.mxu0 %vm3580_vm0, %v3579_v0  ;;  %3331 = vmatprep.mubr.msk.bf16.mxu1 %vm3580_vm0, %v3579_v0 }
  0x46   : > { %3335 = vmatprep.subr.bf16.mxu0 %v3579_v0  ;;  %3341 = vmatprep.subr.bf16.mxu1 %v3579_v0 }
  0x4b   : > { %3326 = vmatmul.mubr.msk.bf16.vlgmr.msra.gmra.mxu0 %vm256_vm2, %v3776_v49  ;;  %3332 = vmatmul.mubr.msk.bf16.vlgmr.msra.gmra.mxu1 %vm256_vm2, %v3779_v50 }
  0x4c   : > { %3336 = vmatpush3.bf16.msra.mxu0 %v998_v51  ;;  %3342 = vmatpush3.bf16.msra.mxu1 %v1044_v52 }
  0x4d   : > { %3337 = vmatprep.mubr.msk.bf16.mxu0 %vm3580_vm0, %v3579_v0  ;;  %3343 = vmatprep.mubr.msk.bf16.mxu1 %vm3580_vm0, %v3579_v0 }
  0x4e   : > { %3347 = vmatprep.subr.bf16.mxu0 %v3579_v0  ;;  %3353 = vmatprep.subr.bf16.mxu1 %v3579_v0 }
  0x53   : > { %3338 = vmatmul.mubr.msk.bf16.vlgmr.msra.gmra.mxu0 %vm256_vm2, %v3796_v55  ;;  %3344 = vmatmul.mubr.msk.bf16.vlgmr.msra.gmra.mxu1 %vm256_vm2, %v3799_v56 }
  0x54   : > { %3348 = vmatpush3.bf16.msra.mxu0 %v1090_v57  ;;  %3354 = vmatpush3.bf16.msra.mxu1 %v1136_v58 }
  0x55   : > { %3349 = vmatprep.mubr.msk.bf16.mxu0 %vm3580_vm0, %v3579_v0  ;;  %3355 = vmatprep.mubr.msk.bf16.mxu1 %vm3580_vm0, %v3579_v0 }
  0x56   : > { %3359 = vmatprep.subr.bf16.mxu0 %v3579_v0  ;;  %3365 = vmatprep.subr.bf16.mxu1 %v3579_v0 }
  0x5b   : > { %3350 = vmatmul.mubr.msk.bf16.vlgmr.msra.gmra.mxu0 %vm256_vm2, %v3816_v61  ;;  %3356 = vmatmul.mubr.msk.bf16.vlgmr.msra.gmra.mxu1 %vm256_vm2, %v3819_v62 }
  0x5c   : > { %3360 = vmatpush3.bf16.msra.mxu0 %v1182_v63  ;;  %3366 = vmatpush3.bf16.msra.mxu1 %v1228_v1 }
  0x5d   : > { %3361 = vmatprep.mubr.msk.bf16.mxu0 %vm3580_vm0, %v3579_v0  ;;  %3367 = vmatprep.mubr.msk.bf16.mxu1 %vm3580_vm0, %v3579_v0 }
  0x5e   : > { %3371 = vmatprep.subr.bf16.mxu0 %v3579_v0  ;;  %3377 = vmatprep.subr.bf16.mxu1 %v3579_v0 }
  0x63   : > { %3362 = vmatmul.mubr.msk.bf16.vlgmr.msra.gmra.mxu0 %vm256_vm2, %v3842_v8  ;;  %3368 = vmatmul.mubr.msk.bf16.vlgmr.msra.gmra.mxu1 %vm256_vm2, %v3845_v9 }
  0x64   : > { %3372 = vmatpush3.bf16.msra.mxu0 %v1274_v10  ;;  %3378 = vmatpush3.bf16.msra.mxu1 %v1320_v11 }
  0x65   : > { %3373 = vmatprep.mubr.msk.bf16.mxu0 %vm3580_vm0, %v3579_v0  ;;  %3379 = vmatprep.mubr.msk.bf16.mxu1 %vm3580_vm0, %v3579_v0 }
  0x66   : > { %3383 = vmatprep.subr.bf16.mxu0 %v247_v12  ;;  %3409 = vmatprep.subr.bf16.mxu1 %v3579_v0 }
  0x6b   : > { %3374 = vmatmul.mubr.msk.bf16.vlgmr.msra.gmra.mxu0 %vm256_vm2, %v3859_v15  ;;  %3380 = vmatmul.mubr.msk.bf16.vlgmr.msra.gmra.mxu1 %vm256_vm2, %v3862_v16 }
  0x6c   : > { %3384 = vmatpush3.bf16.msra.mxu0 %v247_v12  ;;  %3411 = vmatprep.mubr.msk.bf16.mxu1 %vm3580_vm0, %v3579_v0 }
  0x6d   : > { %3445 = vmatprep.subr.bf16.mxu0 %v3579_v0 }
  0xd3   : > { %v298_v17 = vpop.f32.mrf.mxu0  ;;  %v344_v18 = vpop.f32.mrf.mxu1 }
  0xd4   : > { %v1362_v21 = vpack.c.bf16 %v344_v18, %v298_v17 }
  0xd5   : > { %v3243_v22 = vpop.f32.mrf.mxu0  ;;  %v3249_v23 = vpop.f32.mrf.mxu1 }
  0xd6   : > { %3385 = vmatprep.mubr.msk.bf16.mxu0 %vm1378_vm3, %v1362_v21 }
  0xd7   : > { %v301_v24 = vpop.f32.mrf.mxu0  ;;  %v347_v27 = vpop.f32.mrf.mxu1 }
  0xd9   : > { %v3244_v28 = vpop.f32.mrf.mxu0  ;;  %v3250_v29 = vpop.f32.mrf.mxu1 }
  0xdb   : > { %v390_v30 = vpop.f32.mrf.mxu0  ;;  %v436_v33 = vpop.f32.mrf.mxu1 }
  0xdc   : > { %v1363_v34 = vpack.c.bf16 %v436_v33, %v390_v30 }
  0xdd   : > { %v3255_v35 = vpop.f32.mrf.mxu0  ;;  %v3261_v36 = vpop.f32.mrf.mxu1 }
  0xde   : > { %3386 = vmatmul.mubr.msk.bf16.vlgmr.msra.gmra.mxu0 %vm1378_vm3, %v1363_v34 }
  0xdf   : > { %v393_v39 = vpop.f32.mrf.mxu0  ;;  %v439_v40 = vpop.f32.mrf.mxu1 }
  0xe1   : > { %v3256_v41 = vpop.f32.mrf.mxu0  ;;  %v3262_v42 = vpop.f32.mrf.mxu1 }
  0xe3   : > { %v482_v45 = vpop.f32.mrf.mxu0  ;;  %v528_v46 = vpop.f32.mrf.mxu1 }
  0xe4   : > { %v1364_v47 = vpack.c.bf16 %v528_v46, %v482_v45 }
  0xe5   : > { %v3267_v48 = vpop.f32.mrf.mxu0  ;;  %v3273_v51 = vpop.f32.mrf.mxu1 }
  0xe6   : > { %3389 = vmatprep.mubr.msk.bf16.mxu0 %vm1378_vm3, %v1364_v47 }
  0xe7   : > { %v485_v52 = vpop.f32.mrf.mxu0  ;;  %v531_v53 = vpop.f32.mrf.mxu1 }
  0xe9   : > { %v3268_v54 = vpop.f32.mrf.mxu0  ;;  %v3274_v57 = vpop.f32.mrf.mxu1 }
  0xeb   : > { %v574_v58 = vpop.f32.mrf.mxu0  ;;  %v620_v59 = vpop.f32.mrf.mxu1 }
  0xec   : > { %v1365_v60 = vpack.c.bf16 %v620_v59, %v574_v58 }
  0xed   : > { %v3279_v63 = vpop.f32.mrf.mxu0  ;;  %v3285_v1 = vpop.f32.mrf.mxu1 }
  0xee   : > { %3390 = vmatmul.mubr.msk.bf16.gmra.mxu0 %vm1378_vm3, %v1365_v60 }
  0xef   : > { %v577_v2 = vpop.f32.mrf.mxu0  ;;  %v623_v3 = vpop.f32.mrf.mxu1 }
  0xf1   : > { %v3280_v4 = vpop.f32.mrf.mxu0  ;;  %v3286_v5 = vpop.f32.mrf.mxu1 }
  0xf3   : > { %v666_v10 = vpop.f32.mrf.mxu0  ;;  %v712_v11 = vpop.f32.mrf.mxu1 }
  0xf4   : > { %v1366_v12 = vpack.c.bf16 %v712_v11, %v666_v10 }
  0xf5   : > { %v3291_v17 = vpop.f32.mrf.mxu0  ;;  %v3297_v18 = vpop.f32.mrf.mxu1 }
  0xf6   : > { %3393 = vmatprep.mubr.msk.bf16.mxu0 %vm1378_vm3, %v1366_v12 }
  0xf7   : > { %v669_v21 = vpop.f32.mrf.mxu0  ;;  %v715_v22 = vpop.f32.mrf.mxu1 }
  0xf9   : > { %v3292_v23 = vpop.f32.mrf.mxu0  ;;  %v3298_v24 = vpop.f32.mrf.mxu1 }
  0xfb   : > { %v758_v27 = vpop.f32.mrf.mxu0  ;;  %v804_v28 = vpop.f32.mrf.mxu1 }
  0xfc   : > { %v1367_v29 = vpack.c.bf16 %v804_v28, %v758_v27 }
  0xfd   : > { %v3303_v30 = vpop.f32.mrf.mxu0  ;;  %v3309_v33 = vpop.f32.mrf.mxu1 }
  0xfe   : > { %3394 = vmatmul.mubr.msk.bf16.gmra.mxu0 %vm1378_vm3, %v1367_v29 }
  0xff   : > { %v761_v34 = vpop.f32.mrf.mxu0  ;;  %v807_v35 = vpop.f32.mrf.mxu1 }
 0x101   : > { %v3304_v36 = vpop.f32.mrf.mxu0  ;;  %v3310_v39 = vpop.f32.mrf.mxu1 }
 0x103   : > { %v850_v40 = vpop.f32.mrf.mxu0  ;;  %v896_v41 = vpop.f32.mrf.mxu1 }
 0x104   : > { %v1368_v42 = vpack.c.bf16 %v896_v41, %v850_v40 }
 0x105   : > { %v3315_v45 = vpop.f32.mrf.mxu0  ;;  %v3321_v46 = vpop.f32.mrf.mxu1 }
 0x106   : > { %3397 = vmatprep.mubr.msk.bf16.mxu0 %vm1378_vm3, %v1368_v42 }
 0x107   : > { %v853_v47 = vpop.f32.mrf.mxu0  ;;  %v899_v48 = vpop.f32.mrf.mxu1 }
 0x109   : > { %v3316_v51 = vpop.f32.mrf.mxu0  ;;  %v3322_v52 = vpop.f32.mrf.mxu1 }
 0x10b   : > { %v942_v53 = vpop.f32.mrf.mxu0  ;;  %v988_v54 = vpop.f32.mrf.mxu1 }
 0x10c   : > { %v1369_v57 = vpack.c.bf16 %v988_v54, %v942_v53 }
 0x10d   : > { %v3327_v58 = vpop.f32.mrf.mxu0  ;;  %v3333_v59 = vpop.f32.mrf.mxu1 }
 0x10e   : > { %3398 = vmatmul.mubr.msk.bf16.gmra.mxu0 %vm1378_vm3, %v1369_v57 }
 0x10f   : > { %v945_v60 = vpop.f32.mrf.mxu0  ;;  %v991_v63 = vpop.f32.mrf.mxu1 }
 0x111   : > { %v3328_v1 = vpop.f32.mrf.mxu0  ;;  %v3334_v2 = vpop.f32.mrf.mxu1 }
 0x112   : > { %v3888_v1 = vld [vmem:[%s4133_s2 + $0x10] ss:$0 sm:$0xff] }
 0x113   : > { %v1034_v3 = vpop.f32.mrf.mxu0  ;;  %v1080_v4 = vpop.f32.mrf.mxu1 }
 0x114   : > { %v1370_v5 = vpack.c.bf16 %v1080_v4, %v1034_v3 }
 0x115   : > { %v3339_v10 = vpop.f32.mrf.mxu0  ;;  %v3345_v11 = vpop.f32.mrf.mxu1 }
 0x116   : > { %3401 = vmatprep.mubr.msk.bf16.mxu0 %vm1378_vm3, %v1370_v5 }
 0x117   : > { %v1037_v12 = vpop.f32.mrf.mxu0  ;;  %v1083_v17 = vpop.f32.mrf.mxu1 }
 0x119   : > { %v3340_v18 = vpop.f32.mrf.mxu0  ;;  %v3346_v21 = vpop.f32.mrf.mxu1 }
 0x11b   : > { %v1126_v22 = vpop.f32.mrf.mxu0  ;;  %v1172_v23 = vpop.f32.mrf.mxu1 }
 0x11c   : > { %v1371_v24 = vpack.c.bf16 %v1172_v23, %v1126_v22 }
 0x11d   : > { %v3351_v27 = vpop.f32.mrf.mxu0  ;;  %v3357_v28 = vpop.f32.mrf.mxu1 }
 0x11e   : > { %3402 = vmatmul.mubr.msk.bf16.gmra.mxu0 %vm1378_vm3, %v1371_v24 }
 0x11f   : > { %v1129_v29 = vpop.f32.mrf.mxu0  ;;  %v1175_v30 = vpop.f32.mrf.mxu1 }
 0x121   : > { %v3352_v33 = vpop.f32.mrf.mxu0  ;;  %v3358_v34 = vpop.f32.mrf.mxu1 }
 0x123   : > { %v1218_v35 = vpop.f32.mrf.mxu0  ;;  %v1264_v36 = vpop.f32.mrf.mxu1 }
 0x124   : > { %v1372_v39 = vpack.c.bf16 %v1264_v36, %v1218_v35 }
 0x125   : > { %v3363_v40 = vpop.f32.mrf.mxu0  ;;  %v3369_v41 = vpop.f32.mrf.mxu1 }
 0x126   : > { %3405 = vmatprep.mubr.msk.bf16.mxu0 %vm1378_vm3, %v1372_v39 }
 0x127   : > { %v1221_v42 = vpop.f32.mrf.mxu0  ;;  %v1267_v45 = vpop.f32.mrf.mxu1 }
 0x129   : > { %v3364_v46 = vpop.f32.mrf.mxu0  ;;  %v3370_v47 = vpop.f32.mrf.mxu1 }
 0x12b   : > { %v1310_v48 = vpop.f32.mrf.mxu0  ;;  %v1356_v51 = vpop.f32.mrf.mxu1 }
 0x12c   : > { %v1373_v52 = vpack.c.bf16 %v1356_v51, %v1310_v48 }
 0x12d   : > { %v3375_v53 = vpop.f32.mrf.mxu0  ;;  %v3381_v54 = vpop.f32.mrf.mxu1 }
 0x12e   : > { %3406 = vmatmul.mubr.msk.bf16.gmra.mxu0 %vm1378_vm3, %v1373_v52 }
 0x12f   : > { %v1313_v57 = vpop.f32.mrf.mxu0  ;;  %v1359_v58 = vpop.f32.mrf.mxu1  ;;  %3447 = vmatprep.mubr.msk.bf16.mxu0 %vm3580_vm0, %v3579_v0 }
 0x131   : > { %v3376_v59 = vpop.f32.mrf.mxu0  ;;  %v3382_v60 = vpop.f32.mrf.mxu1 }
 0x19e   : > { %v3387_v63 = vpop.f32.mrf.mxu0 }
 0x19f   : > { %v1458_v17 = vadd.f32 %v3387_v63, %v3888_v1 }
 0x1a0   : > { %v1449_v2 = vpop.f32.mrf.mxu0 }
 0x1a1   : > { %v1450_v3 = vadd.f32 %v3888_v1, %v1449_v2  ;;  %v1546_v23 = vmax.f32 %v1458_v17, 0.0 }
 0x1a2   : > { %v3388_v4 = vpop.f32.mrf.mxu0 }
 0x1a3   : > { %v1544_v5 = vmax.f32 %v1450_v3, 0.0  ;;  %v1570_v28 = vpack.c.bf16 %v1546_v23, %v1546_v23  ;;  %v1461_v29 = vadd.f32 %v3388_v4, %v3888_v1 }
 0x1a4   : > { %v1452_v10 = vpop.f32.mrf.mxu0 }
 0x1a5   : > { %v1568_v11 = vpack.c.bf16 %v1544_v5, %v1544_v5  ;;  %v1453_v12 = vadd.f32 %v3888_v1, %v1452_v10  ;;  %v1547_v34 = vmax.f32 %v1461_v29, 0.0 }
 0x1a7   : > { %v1545_v18 = vmax.f32 %v1453_v12, 0.0  ;;  %v1593_v21 = vsel %vm260_vm1, %v1568_v11, 0  ;;  %v1571_v41 = vpack.c.bf16 %v1547_v34, %v1547_v34 }
 0x1a8   : > { %3410 = vmatpush3.bf16.msra.mxu1 %v1593_v21 }
 0x1a9   : > { %v1569_v22 = vpack.c.bf16 %v1545_v18, %v1545_v18  ;;  %3415 = vmatprep.subr.bf16.mxu1 %v3579_v0 }
 0x1ab   : > { %3412 = vmatmul.mubr.msk.bf16.vlgmr.msra.gmra.mxu1 %vm256_vm2, %v3633_v6  ;;  %v1636_v24 = vsel %vm260_vm1, %v1569_v22, 0  ;;  %v1679_v6 = vsel %vm260_vm1, %v1570_v28, 0 }
 0x1ac   : > { %3416 = vmatpush3.bf16.msra.mxu1 %v1636_v24  ;;  %3417 = vmatprep.mubr.msk.bf16.mxu1 %vm3580_vm0, %v3579_v0 }
 0x1ad   : > { %3421 = vmatprep.subr.bf16.mxu1 %v3579_v0 }
 0x1ae   : > { %v3391_v27 = vpop.f32.mrf.mxu0 }
 0x1af   : > { %v1474_v30 = vadd.f32 %v3391_v27, %v3888_v1 }
 0x1b0   : > { %v1465_v36 = vpop.f32.mrf.mxu0 }
 0x1b1   : > { %v1550_v33 = vmax.f32 %v1474_v30, 0.0  ;;  %v1466_v39 = vadd.f32 %v3888_v1, %v1465_v36 }
 0x1b2   : > { %v3392_v42 = vpop.f32.mrf.mxu0 }
 0x1b3   : > { %v1574_v35 = vpack.c.bf16 %v1550_v33, %v1550_v33  ;;  %3418 = vmatmul.mubr.msk.bf16.vlgmr.msra.gmra.mxu1 %vm256_vm2, %v3636_v7  ;;  %v1548_v45 = vmax.f32 %v1466_v39, 0.0  ;;  %v1722_v7 = vsel %vm260_vm1, %v1571_v41, 0  ;;  %v1477_v2 = vadd.f32 %v3392_v42, %v3888_v1 }
 0x1b4   : > { %3422 = vmatpush3.bf16.msra.mxu1 %v1679_v6  ;;  %3423 = vmatprep.mubr.msk.bf16.mxu1 %vm3580_vm0, %v3579_v0  ;;  %v1468_v46 = vpop.f32.mrf.mxu0 }
 0x1b5   : > { %v1851_v40 = vsel %vm260_vm1, %v1574_v35, 0  ;;  %3427 = vmatprep.subr.bf16.mxu1 %v3579_v0  ;;  %v1572_v47 = vpack.c.bf16 %v1548_v45, %v1548_v45  ;;  %v1469_v51 = vadd.f32 %v3888_v1, %v1468_v46  ;;  %v1551_v10 = vmax.f32 %v1477_v2, 0.0 }
 0x1b6   : > { %3446 = vmatpush3.bf16.msra.mxu0 %v1851_v40 }
 0x1b7   : > { %3457 = vmatprep.subr.bf16.mxu0 %v3579_v0  ;;  %v1765_v53 = vsel %vm260_vm1, %v1572_v47, 0  ;;  %v1549_v57 = vmax.f32 %v1469_v51, 0.0 }
 0x1b9   : > { %3448 = vmatmul.mubr.msk.bf16.vlgmr.msra.gmra.mxu0 %vm256_vm2, %v3696_v25  ;;  %v1573_v3 = vpack.c.bf16 %v1549_v57, %v1549_v57 }
 0x1ba   : > { %3459 = vmatprep.mubr.msk.bf16.mxu0 %vm3580_vm0, %v3579_v0 }
 0x1bb   : > { %3424 = vmatmul.mubr.msk.bf16.vlgmr.msra.gmra.mxu1 %vm256_vm2, %v3656_v13  ;;  %v1808_v11 = vsel %vm260_vm1, %v1573_v3, 0 }
 0x1bc   : > { %3428 = vmatpush3.bf16.msra.mxu1 %v1722_v7  ;;  %3429 = vmatprep.mubr.msk.bf16.mxu1 %vm3580_vm0, %v3579_v0 }
 0x1bd   : > { %3433 = vmatprep.subr.bf16.mxu1 %v3579_v0 }
 0x1be   : > { %v3395_v48 = vpop.f32.mrf.mxu0 }
 0x1bf   : > { %v1490_v25 = vadd.f32 %v3395_v48, %v3888_v1 }
 0x1c0   : > { %v1481_v52 = vpop.f32.mrf.mxu0 }
 0x1c1   : > { %v1482_v13 = vadd.f32 %v3888_v1, %v1481_v52  ;;  %v1554_v54 = vmax.f32 %v1490_v25, 0.0 }
 0x1c2   : > { %v3396_v63 = vpop.f32.mrf.mxu0 }
 0x1c3   : > { %3430 = vmatmul.mubr.msk.bf16.vlgmr.msra.gmra.mxu1 %vm256_vm2, %v3659_v14  ;;  %v1552_v58 = vmax.f32 %v1482_v13, 0.0  ;;  %v1578_v60 = vpack.c.bf16 %v1554_v54, %v1554_v54 }
 0x1c4   : > { %3434 = vmatpush3.bf16.msra.mxu1 %v1765_v53  ;;  %3435 = vmatprep.mubr.msk.bf16.mxu1 %vm3580_vm0, %v3579_v0  ;;  %v1484_v5 = vpop.f32.mrf.mxu0 }
 0x1c5   : > { %3439 = vmatprep.subr.bf16.mxu1 %v3579_v0  ;;  %v1576_v59 = vpack.c.bf16 %v1552_v58, %v1552_v58  ;;  %v2023_v14 = vsel %vm260_vm1, %v1578_v60, 0  ;;  %v1485_v12 = vadd.f32 %v3888_v1, %v1484_v5 }
 0x1c7   : > { %v1937_v4 = vsel %vm260_vm1, %v1576_v59, 0 }
 0x1c8   : > { %3458 = vmatpush3.bf16.msra.mxu0 %v1937_v4 }
 0x1c9   : > { %3469 = vmatprep.subr.bf16.mxu0 %v3579_v0 }
 0x1cb   : > { %3436 = vmatmul.mubr.msk.bf16.vlgmr.msra.gmra.mxu1 %vm256_vm2, %v3676_v19  ;;  %3460 = vmatmul.mubr.msk.bf16.vlgmr.msra.gmra.mxu0 %vm256_vm2, %v3716_v31  ;;  %v1575_v19 = vpack.c.bf16 %v1551_v10, %v1551_v10  ;;  %v1553_v31 = vmax.f32 %v1485_v12, 0.0 }
 0x1cc   : > { %3440 = vmatpush3.bf16.msra.mxu1 %v1808_v11  ;;  %3441 = vmatprep.mubr.msk.bf16.mxu1 %vm3580_vm0, %v3579_v0 }
 0x1cd   : > { %3451 = vmatprep.subr.bf16.mxu1 %v3579_v0  ;;  %3470 = vmatpush3.bf16.msra.mxu0 %v2023_v14  ;;  %v1894_v24 = vsel %vm260_vm1, %v1575_v19, 0  ;;  %v1577_v28 = vpack.c.bf16 %v1553_v31, %v1553_v31 }
 0x1ce   : > { %v3399_v17 = vpop.f32.mrf.mxu0  ;;  %3471 = vmatprep.mubr.msk.bf16.mxu0 %vm3580_vm0, %v3579_v0  ;;  %3481 = vmatprep.subr.bf16.mxu0 %v3579_v0 }
 0x1cf   : > { %v1506_v18 = vadd.f32 %v3399_v17, %v3888_v1 }
 0x1d0   : > { %v1497_v21 = vpop.f32.mrf.mxu0 }
 0x1d1   : > { %v1498_v22 = vadd.f32 %v3888_v1, %v1497_v21  ;;  %v1558_v23 = vmax.f32 %v1506_v18, 0.0 }
 0x1d2   : > { %v3400_v33 = vpop.f32.mrf.mxu0 }
 0x1d3   : > { %3442 = vmatmul.mubr.msk.bf16.vlgmr.msra.gmra.mxu1 %vm256_vm2, %v3679_v20  ;;  %v1556_v27 = vmax.f32 %v1498_v22, 0.0  ;;  %3472 = vmatmul.mubr.msk.bf16.vlgmr.msra.gmra.mxu0 %vm256_vm2, %v3736_v37  ;;  %v1582_v30 = vpack.c.bf16 %v1558_v23, %v1558_v23  ;;  %v1493_v20 = vadd.f32 %v3396_v63, %v3888_v1  ;;  %v1980_v37 = vsel %vm260_vm1, %v1577_v28, 0 }
 0x1d4   : > { %3452 = vmatpush3.bf16.msra.mxu1 %v1894_v24  ;;  %3453 = vmatprep.mubr.msk.bf16.mxu1 %vm3580_vm0, %v3579_v0  ;;  %v1500_v35 = vpop.f32.mrf.mxu0 }
 0x1d5   : > { %3463 = vmatprep.subr.bf16.mxu1 %v3579_v0  ;;  %v1580_v29 = vpack.c.bf16 %v1556_v27, %v1556_v27  ;;  %3483 = vmatprep.mubr.msk.bf16.mxu0 %vm3580_vm0, %v3579_v0  ;;  %v2195_v6 = vsel %vm260_vm1, %v1582_v30, 0  ;;  %v1555_v36 = vmax.f32 %v1493_v20, 0.0  ;;  %v1501_v39 = vadd.f32 %v3888_v1, %v1500_v35 }
 0x1d7   : > { %v2109_v34 = vsel %vm260_vm1, %v1580_v29, 0  ;;  %v1579_v41 = vpack.c.bf16 %v1555_v36, %v1555_v36 }
 0x1d8   : > { %3482 = vmatpush3.bf16.msra.mxu0 %v2109_v34 }
 0x1d9   : > { %3493 = vmatprep.subr.bf16.mxu0 %v3579_v0  ;;  %v2066_v46 = vsel %vm260_vm1, %v1579_v41, 0 }
 0x1db   : > { %3454 = vmatmul.mubr.msk.bf16.vlgmr.msra.gmra.mxu1 %vm256_vm2, %v3699_v26  ;;  %3484 = vmatmul.mubr.msk.bf16.vlgmr.msra.gmra.mxu0 %vm256_vm2, %v3756_v43  ;;  %v1557_v43 = vmax.f32 %v1501_v39, 0.0 }
 0x1dc   : > { %3464 = vmatpush3.bf16.msra.mxu1 %v1980_v37  ;;  %3465 = vmatprep.mubr.msk.bf16.mxu1 %vm3580_vm0, %v3579_v0 }
 0x1dd   : > { %3475 = vmatprep.subr.bf16.mxu1 %v3579_v0  ;;  %3494 = vmatpush3.bf16.msra.mxu0 %v2195_v6  ;;  %v1581_v48 = vpack.c.bf16 %v1557_v43, %v1557_v43 }
 0x1de   : > { %v3403_v40 = vpop.f32.mrf.mxu0  ;;  %3495 = vmatprep.mubr.msk.bf16.mxu0 %vm3580_vm0, %v3579_v0  ;;  %3505 = vmatprep.subr.bf16.mxu0 %v3579_v0 }
 0x1df   : > { %v1522_v26 = vadd.f32 %v3403_v40, %v3888_v1 }
 0x1e0   : > { %v1513_v42 = vpop.f32.mrf.mxu0 }
 0x1e1   : > { %v1514_v45 = vadd.f32 %v3888_v1, %v1513_v42  ;;  %v1562_v7 = vmax.f32 %v1522_v26, 0.0 }
 0x1e2   : > { %v3404_v52 = vpop.f32.mrf.mxu0 }
 0x1e3   : > { %3466 = vmatmul.mubr.msk.bf16.vlgmr.msra.gmra.mxu1 %vm256_vm2, %v3719_v32  ;;  %v1560_v47 = vmax.f32 %v1514_v45, 0.0  ;;  %3496 = vmatmul.mubr.msk.bf16.vlgmr.msra.gmra.mxu0 %vm256_vm2, %v3776_v49  ;;  %v1586_v25 = vpack.c.bf16 %v1562_v7, %v1562_v7  ;;  %v1509_v32 = vadd.f32 %v3400_v33, %v3888_v1  ;;  %v2152_v49 = vsel %vm260_vm1, %v1581_v48, 0 }
 0x1e4   : > { %3476 = vmatpush3.bf16.msra.mxu1 %v2066_v46  ;;  %3477 = vmatprep.mubr.msk.bf16.mxu1 %vm3580_vm0, %v3579_v0  ;;  %v1516_v13 = vpop.f32.mrf.mxu0 }
 0x1e5   : > { %3487 = vmatprep.subr.bf16.mxu1 %v3579_v0  ;;  %v1584_v51 = vpack.c.bf16 %v1560_v47, %v1560_v47  ;;  %3507 = vmatprep.mubr.msk.bf16.mxu0 %vm3580_vm0, %v3579_v0  ;;  %v2367_v54 = vsel %vm260_vm1, %v1586_v25, 0  ;;  %v1559_v57 = vmax.f32 %v1509_v32, 0.0  ;;  %v1517_v58 = vadd.f32 %v3888_v1, %v1516_v13 }
 0x1e7   : > { %v2281_v53 = vsel %vm260_vm1, %v1584_v51, 0  ;;  %v1583_v60 = vpack.c.bf16 %v1559_v57, %v1559_v57 }
 0x1e8   : > { %3506 = vmatpush3.bf16.msra.mxu0 %v2281_v53 }
 0x1e9   : > { %3517 = vmatprep.subr.bf16.mxu0 %v3579_v0  ;;  %v2238_v4 = vsel %vm260_vm1, %v1583_v60, 0 }
 0x1eb   : > { %3478 = vmatmul.mubr.msk.bf16.vlgmr.msra.gmra.mxu1 %vm256_vm2, %v3739_v38  ;;  %3508 = vmatmul.mubr.msk.bf16.vlgmr.msra.gmra.mxu0 %vm256_vm2, %v3796_v55  ;;  %v1561_v55 = vmax.f32 %v1517_v58, 0.0 }
 0x1ec   : > { %3488 = vmatpush3.bf16.msra.mxu1 %v2152_v49  ;;  %3489 = vmatprep.mubr.msk.bf16.mxu1 %vm3580_vm0, %v3579_v0 }
 0x1ed   : > { %3499 = vmatprep.subr.bf16.mxu1 %v3579_v0  ;;  %3518 = vmatpush3.bf16.msra.mxu0 %v2367_v54  ;;  %v1585_v14 = vpack.c.bf16 %v1561_v55, %v1561_v55 }
 0x1ee   : > { %v3407_v59 = vpop.f32.mrf.mxu0  ;;  %3519 = vmatprep.mubr.msk.bf16.mxu0 %vm3580_vm0, %v3579_v0  ;;  %3529 = vmatprep.subr.bf16.mxu0 %v3579_v0 }
 0x1ef   : > { %v1538_v38 = vadd.f32 %v3407_v59, %v3888_v1 }
 0x1f0   : > { %v1529_v63 = vpop.f32.mrf.mxu0 }
 0x1f1   : > { %v1530_v2 = vadd.f32 %v3888_v1, %v1529_v63  ;;  %v1566_v3 = vmax.f32 %v1538_v38, 0.0 }
 0x1f2   : > { %v3408_v12 = vpop.f32.mrf.mxu0 }
 0x1f3   : > { %3490 = vmatmul.mubr.msk.bf16.vlgmr.msra.gmra.mxu1 %vm256_vm2, %v3759_v44  ;;  %v1564_v5 = vmax.f32 %v1530_v2, 0.0  ;;  %3520 = vmatmul.mubr.msk.bf16.vlgmr.msra.gmra.mxu0 %vm256_vm2, %v3816_v61  ;;  %v1590_v11 = vpack.c.bf16 %v1566_v3, %v1566_v3  ;;  %v1525_v44 = vadd.f32 %v3404_v52, %v3888_v1  ;;  %v2324_v61 = vsel %vm260_vm1, %v1585_v14, 0 }
 0x1f4   : > { %3500 = vmatpush3.bf16.msra.mxu1 %v2238_v4  ;;  %3501 = vmatprep.mubr.msk.bf16.mxu1 %vm3580_vm0, %v3579_v0  ;;  %v1532_v19 = vpop.f32.mrf.mxu0  ;;  %v1541_v24 = vadd.f32 %v3408_v12, %v3888_v1 }
 0x1f5   : > { %3511 = vmatprep.subr.bf16.mxu1 %v3579_v0  ;;  %v1588_v10 = vpack.c.bf16 %v1564_v5, %v1564_v5  ;;  %3531 = vmatprep.mubr.msk.bf16.mxu0 %vm3580_vm0, %v3579_v0  ;;  %v2539_v18 = vsel %vm260_vm1, %v1590_v11, 0  ;;  %v1563_v21 = vmax.f32 %v1525_v44, 0.0  ;;  %v1533_v31 = vadd.f32 %v3888_v1, %v1532_v19  ;;  %v252_v1 = vld [vmem:[%s4133_s2 + $0x29] sm:$0xff] }
 0x1f6   : > { %v1567_v28 = vmax.f32 %v1541_v24, 0.0 }
 0x1f7   : > { %v2453_v17 = vsel %vm260_vm1, %v1588_v10, 0  ;;  %v1587_v22 = vpack.c.bf16 %v1563_v21, %v1563_v21  ;;  %v1565_v23 = vmax.f32 %v1533_v31, 0.0 }
 0x1f8   : > { %3530 = vmatpush3.bf16.msra.mxu0 %v2453_v17 }
 0x1f9   : > { %3541 = vmatprep.subr.bf16.mxu0 %v3579_v0 }
 0x1fb   : > { %3502 = vmatmul.mubr.msk.bf16.vlgmr.msra.gmra.mxu1 %vm256_vm2, %v3779_v50  ;;  %3532 = vmatmul.mubr.msk.bf16.vlgmr.msra.gmra.mxu0 %vm256_vm2, %v3842_v8  ;;  %v2410_v50 = vsel %vm260_vm1, %v1587_v22, 0  ;;  %v1589_v8 = vpack.c.bf16 %v1565_v23, %v1565_v23 }
 0x1fc   : > { %3512 = vmatpush3.bf16.msra.mxu1 %v2324_v61  ;;  %3513 = vmatprep.mubr.msk.bf16.mxu1 %vm3580_vm0, %v3579_v0 }
 0x1fd   : > { %3523 = vmatprep.subr.bf16.mxu1 %v3579_v0  ;;  %3542 = vmatpush3.bf16.msra.mxu0 %v2539_v18  ;;  %v2496_v27 = vsel %vm260_vm1, %v1589_v8, 0 }
 0x1fe   : > { %3543 = vmatprep.mubr.msk.bf16.mxu0 %vm3580_vm0, %v3579_v0 }
 0x203   : > { %3514 = vmatmul.mubr.msk.bf16.vlgmr.msra.gmra.mxu1 %vm256_vm2, %v3799_v56  ;;  %3544 = vmatmul.mubr.msk.bf16.vlgmr.msra.gmra.mxu0 %vm256_vm2, %v3859_v15  ;;  %v1591_v56 = vpack.c.bf16 %v1567_v28, %v1567_v28 }
 0x204   : > { %3524 = vmatpush3.bf16.msra.mxu1 %v2410_v50  ;;  %3525 = vmatprep.mubr.msk.bf16.mxu1 %vm3580_vm0, %v3579_v0 }
 0x205   : > { %3535 = vmatprep.subr.bf16.mxu1 %v3579_v0  ;;  %v2582_v15 = vsel %vm260_vm1, %v1591_v56, 0 }
 0x20b   : > { %3526 = vmatmul.mubr.msk.bf16.vlgmr.msra.gmra.mxu1 %vm256_vm2, %v3819_v62  ;;  %v251_v62 = vld [vmem:[%s4133_s2 + $0x21] sm:$0xff] }
 0x20c   : > { %3536 = vmatpush3.bf16.msra.mxu1 %v2496_v27  ;;  %3537 = vmatprep.mubr.msk.bf16.mxu1 %vm3580_vm0, %v3579_v0  ;;  %v254_v29 = vpack.c.bf16 %v252_v1, %v251_v62 }
 0x20d   : > { %3547 = vmatprep.subr.bf16.mxu1 %v3579_v0 }
 0x20e   : > { %3553 = vmatprep.subr.bf16.mxu0 %v254_v29 }
 0x20f   : > { %3554 = vmatpush3.bf16.msra.mxu0 %v254_v29 }
 0x213   : > { %3538 = vmatmul.mubr.msk.bf16.vlgmr.msra.gmra.mxu1 %vm256_vm2, %v3845_v9 }
 0x214   : > { %3548 = vmatpush3.bf16.msra.mxu1 %v2582_v15  ;;  %3549 = vmatprep.mubr.msk.bf16.mxu1 %vm3580_vm0, %v3579_v0  ;;  %v249_v0 = vld [vmem:[%s4133_s2 + $0x11] sm:$0xff] }
 0x21b   : > { %3550 = vmatmul.mubr.msk.bf16.vlgmr.msra.gmra.mxu1 %vm256_vm2, %v3862_v16  ;;  %v250_v16 = vld [vmem:[%s4133_s2 + $0x19] sm:$0xff] }
 0x21c   : > { %v253_v34 = vpack.c.bf16 %v250_v16, %v249_v0 }
 0x21e   : > { %3555 = vmatprep.subr.bf16.mxu0 %v253_v34 }
 0x21f   : > { %3556 = vmatpush3.bf16.msra.mxu0 %v253_v34 }
 0x26b   : > { %v1629_v9 = vpop.f32.mrf.mxu1 }
 0x26c   : > { %v2625_v30 = vsel %vm2624_vm4, %v1629_v9, 0.0 }
 0x26d   : > { %v2626_v33 = vrot.slane %v2625_v30, 4  ;;  %v3413_v20 = vpop.f32.mrf.mxu1 }
 0x26f   : > { %v2627_v37 = vadd.f32 %v2626_v33, %v2625_v30  ;;  %v1632_v35 = vpop.f32.mrf.mxu1 }
 0x271   : > { %v2628_v6 = vrot.slane %v2627_v37, 2  ;;  %v3414_v36 = vpop.f32.mrf.mxu1 }
 0x273   : > { %v2629_v39 = vadd.f32 %v2628_v6, %v2627_v37  ;;  %v1672_v40 = vpop.f32.mrf.mxu1 }
 0x274   : > { %v2632_v41 = vsel %vm2624_vm4, %v1672_v40, 0.0 }
 0x275   : > { %v2630_v26 = vrot.slane %v2629_v39, 1  ;;  %v2633_v42 = vrot.slane %v2632_v41, 4  ;;  %v3419_v43 = vpop.f32.mrf.mxu1 }
 0x277   : > { %v2634_v45 = vadd.f32 %v2633_v42, %v2632_v41  ;;  %v1675_v7 = vpop.f32.mrf.mxu1  ;;  %v2631_v46 = vadd.f32 %v2630_v26, %v2629_v39 }
 0x279   : > { %v2635_v47 = vrot.slane %v2634_v45, 2  ;;  %v3420_v48 = vpop.f32.mrf.mxu1  ;;  %v1887_v51 = vpop.f32.mrf.mxu0  ;;  %v2794_v53 = vmul.f32 0.125, %v2631_v46 }
 0x27a   : > { %v2667_v63 = vsel %vm2624_vm4, %v1887_v51, 0.0 }
 0x27b   : > { %v2636_v25 = vadd.f32 %v2635_v47, %v2634_v45  ;;  %v1715_v52 = vpop.f32.mrf.mxu1  ;;  %v3449_v32 = vpop.f32.mrf.mxu0  ;;  %v2818_v55 = vpack.c.bf16 %v2794_v53, %v2794_v53  ;;  %v2668_v14 = vrot.slane %v2667_v63, 4 }
 0x27c   : > { %v2639_v13 = vsel %vm2624_vm4, %v1715_v52, 0.0 }
 0x27d   : > { %v2637_v49 = vrot.slane %v2636_v25, 1  ;;  %v3425_v54 = vpop.f32.mrf.mxu1  ;;  %v1890_v57 = vpop.f32.mrf.mxu0  ;;  %v2640_v38 = vrot.slane %v2639_v13, 4  ;;  %v2870_v12 = vunpack.c.l.b16 %v2818_v55  ;;  %v2669_v31 = vadd.f32 %v2668_v14, %v2667_v63 }
 0x27f   : > { %v2638_v58 = vadd.f32 %v2637_v49, %v2636_v25  ;;  %v1718_v59 = vpop.f32.mrf.mxu1  ;;  %v3450_v60 = vpop.f32.mrf.mxu0  ;;  %v2641_v10 = vadd.f32 %v2640_v38, %v2639_v13  ;;  %v2670_v24 = vrot.slane %v2669_v31, 2 }
 0x281   : > { %v2795_v2 = vmul.f32 0.125, %v2638_v58  ;;  %v3426_v3 = vpop.f32.mrf.mxu1  ;;  %v2642_v22 = vrot.slane %v2641_v10, 2  ;;  %v2671_v0 = vadd.f32 %v2670_v24, %v2669_v31 }
 0x283   : > { %v2819_v4 = vpack.c.bf16 %v2795_v2, %v2795_v2  ;;  %v1758_v5 = vpop.f32.mrf.mxu1  ;;  %v2643_v28 = vadd.f32 %v2642_v22, %v2641_v10  ;;  %v2672_v39 = vrot.slane %v2671_v0, 1 }
 0x284   : > { %v2646_v11 = vsel %vm2624_vm4, %v1758_v5, 0.0 }
 0x285   : > { %v2871_v44 = vunpack.c.l.b16 %v2819_v4  ;;  %v2647_v17 = vrot.slane %v2646_v11, 4  ;;  %v3431_v61 = vpop.f32.mrf.mxu1  ;;  %v2644_v33 = vrot.slane %v2643_v28, 1  ;;  %v2673_v51 = vadd.f32 %v2672_v39, %v2671_v0 }
 0x287   : > { %v4070_v19 = vsel %vm2894_vm5, %v2871_v44, %v2870_v12  ;;  %v2648_v18 = vadd.f32 %v2647_v17, %v2646_v11  ;;  %v1761_v21 = vpop.f32.mrf.mxu1  ;;  %v2645_v41 = vadd.f32 %v2644_v33, %v2643_v28  ;;  %v2800_v59 = vmul.f32 0.125, %v2673_v51 }
 0x289   : > { %v2649_v23 = vrot.slane %v2648_v18, 2  ;;  %v3432_v50 = vpop.f32.mrf.mxu1  ;;  %v2796_v32 = vmul.f32 0.125, %v2645_v41  ;;  %v2824_v12 = vpack.c.bf16 %v2800_v59, %v2800_v59 }
 0x28b   : > { %v1801_v8 = vpop.f32.mrf.mxu1  ;;  %v1973_v27 = vpop.f32.mrf.mxu0  ;;  %v2650_v15 = vadd.f32 %v2649_v23, %v2648_v18  ;;  %v2820_v63 = vpack.c.bf16 %v2796_v32, %v2796_v32 }
 0x28c   : > { %v2653_v56 = vsel %vm2624_vm4, %v1801_v8, 0.0  ;;  %v2681_v3 = vsel %vm2624_vm4, %v1973_v27, 0.0  ;;  %v2876_v27 = vunpack.c.l.b16 %v2824_v12 }
 0x28d   : > { %v2654_v62 = vrot.slane %v2653_v56, 4  ;;  %v3437_v1 = vpop.f32.mrf.mxu1  ;;  %v3461_v29 = vpop.f32.mrf.mxu0  ;;  %v2651_v20 = vrot.slane %v2650_v15, 1  ;;  %v2872_v61 = vunpack.c.l.b16 %v2820_v63  ;;  %v2682_v18 = vrot.slane %v2681_v3, 4 }
 0x28f   : > { %v2655_v9 = vadd.f32 %v2654_v62, %v2653_v56  ;;  %v1804_v30 = vpop.f32.mrf.mxu1  ;;  %v1976_v16 = vpop.f32.mrf.mxu0  ;;  %v2652_v42 = vadd.f32 %v2651_v20, %v2650_v15  ;;  %v2897_v62 = vsel %vm2896_vm6, %v2872_v61, %v4070_v19  ;;  %v2683_v1 = vadd.f32 %v2682_v18, %v2681_v3 }
 0x291   : > { %v2656_v34 = vrot.slane %v2655_v9, 2  ;;  %v3438_v37 = vpop.f32.mrf.mxu1  ;;  %v3462_v35 = vpop.f32.mrf.mxu0  ;;  %v2797_v53 = vmul.f32 0.125, %v2652_v42 }
 0x293   : > { %v2657_v6 = vadd.f32 %v2656_v34, %v2655_v9  ;;  %v1844_v36 = vpop.f32.mrf.mxu1  ;;  %v2059_v40 = vpop.f32.mrf.mxu0  ;;  %v2821_v55 = vpack.c.bf16 %v2797_v53, %v2797_v53 }
 0x294   : > { %v2660_v26 = vsel %vm2624_vm4, %v1844_v36, 0.0  ;;  %v2695_v5 = vsel %vm2624_vm4, %v2059_v40, 0.0 }
 0x295   : > { %v2658_v43 = vrot.slane %v2657_v6, 1  ;;  %v2661_v45 = vrot.slane %v2660_v26, 4  ;;  %v3443_v7 = vpop.f32.mrf.mxu1  ;;  %v3473_v46 = vpop.f32.mrf.mxu0  ;;  %v2696_v21 = vrot.slane %v2695_v5, 4  ;;  %v2873_v31 = vunpack.c.l.b16 %v2821_v55 }
 0x297   : > { %v2659_v47 = vadd.f32 %v2658_v43, %v2657_v6  ;;  %v2662_v48 = vadd.f32 %v2661_v45, %v2660_v26  ;;  %v1847_v25 = vpop.f32.mrf.mxu1  ;;  %v2062_v52 = vpop.f32.mrf.mxu0  ;;  %v2697_v9 = vadd.f32 %v2696_v21, %v2695_v5  ;;  %v2899_v30 = vsel %vm2898_vm7, %v2873_v31, %v2897_v62 }
 0x298   : > { %v2684_v26 = vrot.slane %v2683_v1, 2 }
 0x299   : > { %v2663_v49 = vrot.slane %v2662_v48, 2  ;;  %v3444_v13 = vpop.f32.mrf.mxu1  ;;  %v3474_v54 = vpop.f32.mrf.mxu0  ;;  %v2798_v57 = vmul.f32 0.125, %v2659_v47  ;;  %v2698_v42 = vrot.slane %v2697_v9, 2 }
 0x29a   : > { %v2685_v53 = vadd.f32 %v2684_v26, %v2683_v1 }
 0x29b   : > { %v2664_v58 = vadd.f32 %v2663_v49, %v2662_v48  ;;  %v1930_v60 = vpop.f32.mrf.mxu1  ;;  %v2145_v38 = vpop.f32.mrf.mxu0  ;;  %v2822_v10 = vpack.c.bf16 %v2798_v57, %v2798_v57  ;;  %v2699_v49 = vadd.f32 %v2698_v42, %v2697_v9 }
 0x29c   : > { %v2709_v56 = vsel %vm2624_vm4, %v2145_v38, 0.0  ;;  %v2674_v16 = vsel %vm2624_vm4, %v1930_v60, 0.0 }
 0x29d   : > { %v2665_v2 = vrot.slane %v2664_v58, 1  ;;  %v3455_v4 = vpop.f32.mrf.mxu1  ;;  %v3485_v14 = vpop.f32.mrf.mxu0  ;;  %v2874_v8 = vunpack.c.l.b16 %v2822_v10  ;;  %v2710_v35 = vrot.slane %v2709_v56, 4  ;;  %v2675_v41 = vrot.slane %v2674_v16, 4 }
 0x29e   : > { %v2686_v4 = vrot.slane %v2685_v53, 1  ;;  %v2700_v5 = vrot.slane %v2699_v49, 1 }
 0x29f   : > { %v2666_v11 = vadd.f32 %v2665_v2, %v2664_v58  ;;  %v1933_v44 = vpop.f32.mrf.mxu1  ;;  %v2148_v17 = vpop.f32.mrf.mxu0  ;;  %v2901_v37 = vsel %vm2900_vm8, %v2874_v8, %v2899_v30  ;;  %v2711_v48 = vadd.f32 %v2710_v35, %v2709_v56  ;;  %v2676_v32 = vadd.f32 %v2675_v41, %v2674_v16 }
 0x2a1   : > { %v2799_v22 = vmul.f32 0.125, %v2666_v11  ;;  %v3456_v23 = vpop.f32.mrf.mxu1  ;;  %v3486_v50 = vpop.f32.mrf.mxu0  ;;  %v2712_v38 = vrot.slane %v2711_v48, 2  ;;  %v2677_v3 = vrot.slane %v2676_v32, 2 }
 0x2a2   : > { %v2701_v23 = vadd.f32 %v2700_v5, %v2699_v49 }
 0x2a3   : > { %v2823_v24 = vpack.c.bf16 %v2799_v22, %v2799_v22  ;;  %v2016_v28 = vpop.f32.mrf.mxu1  ;;  %v2231_v15 = vpop.f32.mrf.mxu0  ;;  %v2713_v17 = vadd.f32 %v2712_v38, %v2711_v48  ;;  %v2678_v31 = vadd.f32 %v2677_v3, %v2676_v32  ;;  %v2687_v22 = vadd.f32 %v2686_v4, %v2685_v53 }
 0x2a4   : > { %v2688_v29 = vsel %vm2624_vm4, %v2016_v28, 0.0  ;;  %v2723_v6 = vsel %vm2624_vm4, %v2231_v15, 0.0 }
 0x2a5   : > { %v2875_v0 = vunpack.c.l.b16 %v2823_v24  ;;  %v2689_v33 = vrot.slane %v2688_v29, 4  ;;  %v3467_v20 = vpop.f32.mrf.mxu1  ;;  %v3497_v34 = vpop.f32.mrf.mxu0  ;;  %v2724_v46 = vrot.slane %v2723_v6, 4  ;;  %v2714_v62 = vrot.slane %v2713_v17, 1 }
 0x2a6   : > { %v2802_v16 = vmul.f32 0.125, %v2687_v22 }
 0x2a7   : > { %v2903_v36 = vsel %vm2902_vm9, %v2875_v0, %v2901_v37  ;;  %v2690_v19 = vadd.f32 %v2689_v33, %v2688_v29  ;;  %v2019_v39 = vpop.f32.mrf.mxu1  ;;  %v2234_v40 = vpop.f32.mrf.mxu0  ;;  %v2725_v58 = vadd.f32 %v2724_v46, %v2723_v6  ;;  %v2679_v0 = vrot.slane %v2678_v31, 1 }
 0x2a8   : > { %v4086_v43 = vsel %vm2904_vm10, %v2876_v27, %v2903_v36  ;;  %v2804_v33 = vmul.f32 0.125, %v2701_v23  ;;  %v2826_v42 = vpack.c.bf16 %v2802_v16, %v2802_v16 }
 0x2a9   : > { %v2691_v45 = vrot.slane %v2690_v19, 2  ;;  %v3468_v7 = vpop.f32.mrf.mxu1  ;;  %v3498_v47 = vpop.f32.mrf.mxu0  ;;  %v2726_v11 = vrot.slane %v2725_v58, 2  ;;  %v2680_v26 = vadd.f32 %v2679_v0, %v2678_v31 }
 0x2ab   : > { %v2692_v51 = vadd.f32 %v2691_v45, %v2690_v19  ;;  %v2102_v25 = vpop.f32.mrf.mxu1  ;;  %v2317_v52 = vpop.f32.mrf.mxu0  ;;  %v2727_v27 = vadd.f32 %v2726_v11, %v2725_v58  ;;  %v2715_v19 = vadd.f32 %v2714_v62, %v2713_v17  ;;  %v2828_v45 = vpack.c.bf16 %v2804_v33, %v2804_v33 }
 0x2ac   : > { %v2702_v13 = vsel %vm2624_vm4, %v2102_v25, 0.0  ;;  %v2801_v38 = vmul.f32 0.125, %v2680_v26 }
 0x2ad   : > { %v2703_v54 = vrot.slane %v2702_v13, 4  ;;  %v3479_v57 = vpop.f32.mrf.mxu1  ;;  %v3509_v59 = vpop.f32.mrf.mxu0  ;;  %v2693_v60 = vrot.slane %v2692_v51, 1  ;;  %v2728_v34 = vrot.slane %v2727_v27, 1 }
 0x2ae   : > { %v2825_v22 = vpack.c.bf16 %v2801_v38, %v2801_v38 }
 0x2af   : > { %v2704_v63 = vadd.f32 %v2703_v54, %v2702_v13  ;;  %v2105_v55 = vpop.f32.mrf.mxu1  ;;  %v2320_v2 = vpop.f32.mrf.mxu0  ;;  %v2694_v44 = vadd.f32 %v2693_v60, %v2692_v51  ;;  %v2729_v47 = vadd.f32 %v2728_v34, %v2727_v27  ;;  %v2737_v51 = vsel %vm2624_vm4, %v2317_v52, 0.0 }
 0x2b0   : > { %v2806_v13 = vmul.f32 0.125, %v2715_v19  ;;  %v2738_v55 = vrot.slane %v2737_v51, 4  ;;  %v2880_v2 = vunpack.c.l.b16 %v2828_v45  ;;  %v2877_v45 = vunpack.c.l.b16 %v2825_v22 }
 0x2b1   : > { %v2705_v14 = vrot.slane %v2704_v63, 2  ;;  %v3480_v10 = vpop.f32.mrf.mxu1  ;;  %v3510_v12 = vpop.f32.mrf.mxu0  ;;  %v2803_v15 = vmul.f32 0.125, %v2694_v44  ;;  %v2808_v4 = vmul.f32 0.125, %v2729_v47 }
 0x2b2   : > { %v2830_v12 = vpack.c.bf16 %v2806_v13, %v2806_v13  ;;  %v2739_v23 = vadd.f32 %v2738_v55, %v2737_v51 }
 0x2b3   : > { %v2706_v61 = vadd.f32 %v2705_v14, %v2704_v63  ;;  %v2188_v18 = vpop.f32.mrf.mxu1  ;;  %v2403_v21 = vpop.f32.mrf.mxu0  ;;  %v2827_v6 = vpack.c.bf16 %v2803_v15, %v2803_v15  ;;  %v2878_v63 = vunpack.c.l.b16 %v2826_v42 }
 0x2b4   : > { %v2716_v50 = vsel %vm2624_vm4, %v2188_v18, 0.0  ;;  %v2751_v59 = vsel %vm2624_vm4, %v2403_v21, 0.0 }
 0x2b5   : > { %v2707_v8 = vrot.slane %v2706_v61, 1  ;;  %v2717_v24 = vrot.slane %v2716_v50, 4  ;;  %v3491_v28 = vpop.f32.mrf.mxu1  ;;  %v3521_v56 = vpop.f32.mrf.mxu0  ;;  %v2879_v53 = vunpack.c.l.b16 %v2827_v6  ;;  %v2752_v44 = vrot.slane %v2751_v59, 4 }
 0x2b6   : > { %v2740_v6 = vrot.slane %v2739_v23, 2 }
 0x2b7   : > { %v2708_v1 = vadd.f32 %v2707_v8, %v2706_v61  ;;  %v2718_v29 = vadd.f32 %v2717_v24, %v2716_v50  ;;  %v2191_v9 = vpop.f32.mrf.mxu1  ;;  %v2406_v30 = vpop.f32.mrf.mxu0  ;;  %v2908_v10 = vsel %vm2894_vm5, %v2879_v53, %v2878_v63  ;;  %v2832_v24 = vpack.c.bf16 %v2808_v4, %v2808_v4 }
 0x2b8   : > { %v2909_v8 = vsel %vm2896_vm6, %v2880_v2, %v2908_v10  ;;  %v2907_v63 = vsel %vm2906_vm11, %v2877_v45, %v4086_v43 }
 0x2b9   : > { %v2719_v20 = vrot.slane %v2718_v29, 2  ;;  %v3492_v37 = vpop.f32.mrf.mxu1  ;;  %v3522_v35 = vpop.f32.mrf.mxu0  ;;  %v2805_v36 = vmul.f32 0.125, %v2708_v1  ;;  %v2882_v1 = vunpack.c.l.b16 %v2830_v12 }
 0x2ba   : > { %v2884_v37 = vunpack.c.l.b16 %v2832_v24 }
 0x2bb   : > { %v2720_v39 = vadd.f32 %v2719_v20, %v2718_v29  ;;  %v2274_v40 = vpop.f32.mrf.mxu1  ;;  %v2489_v41 = vpop.f32.mrf.mxu0  ;;  %v2829_v49 = vpack.c.bf16 %v2805_v36, %v2805_v36  ;;  %v2753_v29 = vadd.f32 %v2752_v44, %v2751_v59 }
 0x2bc   : > { %v2730_v7 = vsel %vm2624_vm4, %v2274_v40, 0.0  ;;  %v2765_v21 = vsel %vm2624_vm4, %v2489_v41, 0.0 }
 0x2bd   : > { %v2721_v46 = vrot.slane %v2720_v39, 1  ;;  %v2731_v48 = vrot.slane %v2730_v7, 4  ;;  %v3503_v25 = vpop.f32.mrf.mxu1  ;;  %v3533_v32 = vpop.f32.mrf.mxu0  ;;  %v2881_v11 = vunpack.c.l.b16 %v2829_v49  ;;  %v2766_v9 = vrot.slane %v2765_v21, 4 }
 0x2be   : > { %v2754_v41 = vrot.slane %v2753_v29, 2  ;;  %v2741_v32 = vadd.f32 %v2740_v6, %v2739_v23 }
 0x2bf   : > { %v2722_v54 = vadd.f32 %v2721_v46, %v2720_v39  ;;  %v2732_v57 = vadd.f32 %v2731_v48, %v2730_v7  ;;  %v2277_v58 = vpop.f32.mrf.mxu1  ;;  %v2492_v60 = vpop.f32.mrf.mxu0  ;;  %v2910_v62 = vsel %vm2898_vm7, %v2881_v11, %v2909_v8  ;;  %v2767_v26 = vadd.f32 %v2766_v9, %v2765_v21 }
 0x2c0   : > { %v2911_v40 = vsel %vm2900_vm8, %v2882_v1, %v2910_v62  ;;  %v2755_v13 = vadd.f32 %v2754_v41, %v2753_v29 }
 0x2c1   : > { %v2807_v3 = vmul.f32 0.125, %v2722_v54  ;;  %v2733_v5 = vrot.slane %v2732_v57, 2  ;;  %v3504_v14 = vpop.f32.mrf.mxu1  ;;  %v3534_v52 = vpop.f32.mrf.mxu0  ;;  %v2768_v54 = vrot.slane %v2767_v26, 2 }
 0x2c2   : > { %v2756_v14 = vrot.slane %v2755_v13, 1 }
 0x2c3   : > { %v2831_v17 = vpack.c.bf16 %v2807_v3, %v2807_v3  ;;  %v2734_v61 = vadd.f32 %v2733_v5, %v2732_v57  ;;  %v2360_v18 = vpop.f32.mrf.mxu1  ;;  %v2575_v31 = vpop.f32.mrf.mxu0  ;;  %v2742_v3 = vrot.slane %v2741_v32, 1  ;;  %v2769_v52 = vadd.f32 %v2768_v54, %v2767_v26 }
 0x2c4   : > { %v2744_v50 = vsel %vm2624_vm4, %v2360_v18, 0.0  ;;  %v2779_v20 = vsel %vm2624_vm4, %v2575_v31, 0.0  ;;  %v2757_v31 = vadd.f32 %v2756_v14, %v2755_v13 }
 0x2c5   : > { %v2735_v27 = vrot.slane %v2734_v61, 1  ;;  %v2745_v28 = vrot.slane %v2744_v50, 4  ;;  %v3515_v56 = vpop.f32.mrf.mxu1  ;;  %v3545_v15 = vpop.f32.mrf.mxu0  ;;  %v2883_v30 = vunpack.c.l.b16 %v2831_v17  ;;  %v2780_v42 = vrot.slane %v2779_v20, 4 }
 0x2c6   : > { %v2770_v22 = vrot.slane %v2769_v52, 1  ;;  %v2812_v62 = vmul.f32 0.125, %v2757_v31 }
 0x2c7   : > { %v2736_v0 = vadd.f32 %v2735_v27, %v2734_v61  ;;  %v2746_v16 = vadd.f32 %v2745_v28, %v2744_v50  ;;  %v2363_v33 = vpop.f32.mrf.mxu1  ;;  %v2578_v34 = vpop.f32.mrf.mxu0  ;;  %v2912_v7 = vsel %vm2902_vm9, %v2883_v30, %v2911_v40  ;;  %v2781_v58 = vadd.f32 %v2780_v42, %v2779_v20 }
 0x2c8   : > { %v2913_v57 = vsel %vm2904_vm10, %v2884_v37, %v2912_v7  ;;  %v2743_v61 = vadd.f32 %v2742_v3, %v2741_v32  ;;  %v2771_v1 = vadd.f32 %v2770_v22, %v2769_v52  ;;  %v2836_v6 = vpack.c.bf16 %v2812_v62, %v2812_v62 }
 0x2c9   : > { %v2809_v35 = vmul.f32 0.125, %v2736_v0  ;;  %v2747_v36 = vrot.slane %v2746_v16, 2  ;;  %v3516_v19 = vpop.f32.mrf.mxu1  ;;  %v3546_v39 = vpop.f32.mrf.mxu0  ;;  %v2782_v10 = vrot.slane %v2781_v58, 2 }
 0x2ca   : > { %v2810_v28 = vmul.f32 0.125, %v2743_v61 }
 0x2cb   : > { %v2833_v46 = vpack.c.bf16 %v2809_v35, %v2809_v35  ;;  %v2748_v47 = vadd.f32 %v2747_v36, %v2746_v16  ;;  %v2446_v48 = vpop.f32.mrf.mxu1  ;;  %v2783_v23 = vadd.f32 %v2782_v10, %v2781_v58  ;;  %v2814_v36 = vmul.f32 0.125, %v2771_v1 }
 0x2cc   : > { %v2758_v51 = vsel %vm2624_vm4, %v2446_v48, 0.0  ;;  %v2834_v20 = vpack.c.bf16 %v2810_v28, %v2810_v28  ;;  %v2888_v48 = vunpack.c.l.b16 %v2836_v6 }
 0x2cd   : > { %v2885_v25 = vunpack.c.l.b16 %v2833_v46  ;;  %v2759_v53 = vrot.slane %v2758_v51, 4  ;;  %v3527_v49 = vpop.f32.mrf.mxu1  ;;  %v2749_v59 = vrot.slane %v2748_v47, 1  ;;  %v2784_v29 = vrot.slane %v2783_v23, 1 }
 0x2ce   : > { %v2886_v45 = vunpack.c.l.b16 %v2834_v20 }
 0x2cf   : > { %v2760_v60 = vadd.f32 %v2759_v53, %v2758_v51  ;;  %v2449_v38 = vpop.f32.mrf.mxu1  ;;  %v2914_v55 = vsel %vm2906_vm11, %v2885_v25, %v2913_v57  ;;  %v2750_v11 = vadd.f32 %v2749_v59, %v2748_v47  ;;  %v2785_v19 = vadd.f32 %v2784_v29, %v2783_v23 }
 0x2d0   : > { %v2922_v2 = vpack.c.b16 %v2914_v55, %v2907_v63  ;;  %v2838_v51 = vpack.c.bf16 %v2814_v36, %v2814_v36 }
 0x2d1   : > { %v2761_v4 = vrot.slane %v2760_v60, 2  ;;  %v3528_v5 = vpop.f32.mrf.mxu1  ;;  %v2811_v50 = vmul.f32 0.125, %v2750_v11  ;;  %v2816_v25 = vmul.f32 0.125, %v2785_v19 }
 0x2d2   : > { %3557 = vmatprep.mubr.msk.bf16.mxu0 %vm2624_vm4, %v2922_v2  ;;  %v2890_v58 = vunpack.c.l.b16 %v2838_v51 }
 0x2d3   : > { %v2762_v12 = vadd.f32 %v2761_v4, %v2760_v60  ;;  %v2532_v44 = vpop.f32.mrf.mxu1  ;;  %v2835_v9 = vpack.c.bf16 %v2811_v50, %v2811_v50  ;;  %v2840_v59 = vpack.c.bf16 %v2816_v25, %v2816_v25 }
 0x2d4   : > { %v2772_v17 = vsel %vm2624_vm4, %v2532_v44, 0.0 }
 0x2d5   : > { %v2763_v18 = vrot.slane %v2762_v12, 1  ;;  %v2773_v21 = vrot.slane %v2772_v17, 4  ;;  %v3539_v43 = vpop.f32.mrf.mxu1  ;;  %v2887_v39 = vunpack.c.l.b16 %v2835_v9  ;;  %v2892_v3 = vunpack.c.l.b16 %v2840_v59 }
 0x2d7   : > { %v2764_v8 = vadd.f32 %v2763_v18, %v2762_v12  ;;  %v2774_v24 = vadd.f32 %v2773_v21, %v2772_v17  ;;  %v2535_v27 = vpop.f32.mrf.mxu1  ;;  %v2915_v32 = vsel %vm2894_vm5, %v2887_v39, %v2886_v45  ;;  %v3121_v12 = vld [vmem:[%s4133_s2 + $0x31] ss:$0 sm:$0xff] }
 0x2d8   : > { %v2916_v57 = vsel %vm2896_vm6, %v2888_v48, %v2915_v32 }
 0x2d9   : > { %v2775_v56 = vrot.slane %v2774_v24, 2  ;;  %v3540_v15 = vpop.f32.mrf.mxu1  ;;  %v2813_v30 = vmul.f32 0.125, %v2764_v8 }
 0x2db   : > { %v2776_v0 = vadd.f32 %v2775_v56, %v2774_v24  ;;  %v2618_v16 = vpop.f32.mrf.mxu1  ;;  %v2837_v40 = vpack.c.bf16 %v2813_v30, %v2813_v30 }
 0x2dc   : > { %v2786_v33 = vsel %vm2624_vm4, %v2618_v16, 0.0 }
 0x2dd   : > { %v2777_v34 = vrot.slane %v2776_v0, 1  ;;  %v2787_v37 = vrot.slane %v2786_v33, 4  ;;  %v3551_v35 = vpop.f32.mrf.mxu1  ;;  %v2889_v53 = vunpack.c.l.b16 %v2837_v40 }
 0x2df   : > { %v2778_v41 = vadd.f32 %v2777_v34, %v2776_v0  ;;  %v2788_v26 = vadd.f32 %v2787_v37, %v2786_v33  ;;  %v2621_v42 = vpop.f32.mrf.mxu1  ;;  %v2917_v60 = vsel %vm2898_vm7, %v2889_v53, %v2916_v57 }
 0x2e0   : > { %v2918_v2 = vsel %vm2900_vm8, %v2890_v58, %v2917_v60 }
 0x2e1   : > { %v2815_v7 = vmul.f32 0.125, %v2778_v41  ;;  %v2789_v46 = vrot.slane %v2788_v26, 2  ;;  %v3552_v47 = vpop.f32.mrf.mxu1 }
 0x2e3   : > { %v2839_v49 = vpack.c.bf16 %v2815_v7, %v2815_v7  ;;  %v2790_v13 = vadd.f32 %v2789_v46, %v2788_v26 }
 0x2e5   : > { %v2791_v54 = vrot.slane %v2790_v13, 1  ;;  %v2891_v38 = vunpack.c.l.b16 %v2839_v49 }
 0x2e7   : > { %v2792_v63 = vadd.f32 %v2791_v54, %v2790_v13  ;;  %v2919_v4 = vsel %vm2902_vm9, %v2891_v38, %v2918_v2 }
 0x2e8   : > { %v2920_v52 = vsel %vm2904_vm10, %v2892_v3, %v2919_v4 }
 0x2e9   : > { %v2817_v55 = vmul.f32 0.125, %v2792_v63 }
 0x2eb   : > { %v2841_v5 = vpack.c.bf16 %v2817_v55, %v2817_v55 }
 0x2ed   : > { %v2893_v14 = vunpack.c.l.b16 %v2841_v5 }
 0x2ef   : > { %v2921_v10 = vsel %vm2906_vm11, %v2893_v14, %v2920_v52 }
 0x2f0   : > { %v2923_v11 = vpack.c.b16 %v2921_v10, %v2921_v10 }
 0x2f2   : > { %3558 = vmatmul.mubr.msk.bf16.vlgmr.msra.gmra.mxu0 %vm2624_vm4, %v2923_v11 }
 0x3b2   : > { %v3559_v44 = vpop.f32.mrf.mxu0 }
 0x3b3   : > { %v2973_v17 = vadd.f32 %v3559_v44, %v3121_v12 }
 0x3b4   : > { %v2964_v61 = vpop.f32.mrf.mxu0 }
 0x3b5   : > { %v2980_v18 = vsel %vm2624_vm4, %v2973_v17, 0.0  ;;  %v2965_v21 = vadd.f32 %v3121_v12, %v2964_v61 }
 0x3b6   : > { %2983 = vst [vmem:[%s194_s17 + $0x10] sm:$0xff] %v2980_v18  ;;  %v3560_v43 = vpop.f32.mrf.mxu0 }
 0x3b7   : > { %v2978_v31 = vsel %vm2624_vm4, %v2965_v21, 0.0 }
 0x3b8   : > { %2981 = vst [vmem:[%s194_s17] sm:$0xff] %v2978_v31  ;;  %v2967_v22 = vpop.f32.mrf.mxu0 }
 0x3b9   : > { %v2968_v23 = vadd.f32 %v3121_v12, %v2967_v22 }
 0x3bb   : > { %v2979_v50 = vsel %vm2624_vm4, %v2968_v23, 0.0 }
 0x3bc   : > { %2982 = vst [vmem:[%s194_s17 + $0x8] sm:$0xff] %v2979_v50 }
 0x3bd PF: > { %s13_s12 = sadd.s32 1, %s3577_s12  }
 0x3be   : > { %p10_p5 = scmp.ge.s32.totalorder %s13_s12, 4  }
 0x3c0   :  { %12 = sbr.rel (!%p10_p5) target bundleno = 1 (0x1), region = 65 }

</bundles_post_ra>
